<compile_context>
chip_gen: v7x
topology: tpu7x:2x2x1
jax: 0.10.0
libtpu: 0.0.40
codegen_flags: <defaults>
</compile_context>

<pallas_src>
import jax
import jax.numpy as jnp
from jax.experimental import pallas as pl
from jax.experimental.pallas import tpu as pltpu


def _pick_batch_tile(B, S, E, budget_bytes=8 * 1024 * 1024):
    """Largest divisor bt of B such that:
         * nb = B // bt >= 2 whenever B > 1 (dual-TC split on v7x, DMA/compute overlap),
         * the per-step VMEM working set (2x double-buffered input tile + last-row
           scratch + ~3 live f32 intermediates) fits the budget,
         * bt*S is sublane aligned (multiple of 8) when such a divisor exists.
    """
    per_seq_bytes = S * E * 4 * 6          # 2x dbl-buffered input + scratch + ~3 live temps
    divisors = [d for d in range(1, B + 1) if B % d == 0]
    cands = [d for d in divisors if d < B] or [B]                 # keep nb >= 2 unless B == 1
    fits = [d for d in cands if d * per_seq_bytes <= budget_bytes] or [min(cands)]
    aligned = [d for d in fits if (d * S) % 8 == 0]
    return max(aligned) if aligned else max(fits)


def _make_nextitnet_kernel(dilations, K, S, E, Eo, bt, mm_dtype):
    """Fused forward kernel over one batch tile.

    Activation layout: (N, E), N = bt*S -- `bt` sequences stacked along sublanes,
    embedding on lanes.  The torch Conv2d over (B, E, 1, S+pad) with kernel (1, K),
    dilation d and left zero padding (K-1)*d is
        y[t] = bias + sum_k  x[t - (K-1-k)*d] @ W_k ,   W_k[i, o] = w_torch[o, i, 0, k].
    Each shifted tap is pltpu.roll(x, shift, axis=0) with rows whose source would wrap
    around the tile or cross a sequence boundary zeroed by a hoisted mask; the K taps
    are lane-concatenated so the whole conv is a single (N, K*E) x (K*E, E) matmul.
    """
    N = bt * S
    inv_e = 1.0 / E
    eps = 1e-8

    # unique causal shifts used by any tap of any conv (conv1 uses d, conv2 uses 2d)
    shift_set = set()
    for d in dilations:
        for dd in (d, 2 * d):
            for k in range(K):
                s = (K - 1 - k) * dd
                if 0 < s < S:
                    shift_set.add(s)
    shift_set = tuple(sorted(shift_set))

    def position_in_sequence():
        row = jax.lax.broadcasted_iota(jnp.int32, (N, E), 0)
        if (S & (S - 1)) == 0:                       # power-of-two S: one bitwise AND
            return row & (S - 1)
        # general S: float floor-div (avoids vector integer div/rem on the VPU)
        q = jnp.floor((row.astype(jnp.float32) + 0.5) * (1.0 / S)).astype(jnp.int32)
        return row - q * S

    def kernel(x_ref, w1_ref, b1_ref, g1_ref, be1_ref,
               w2_ref, b2_ref, g2_ref, be2_ref, fw_ref, fb_ref,
               o_ref, hbuf_ref):
        # hoisted per-shift boundary masks, reused by every conv of every layer
        t_in_seq = position_in_sequence()                         # (N, E) int32
        masks = {s: t_in_seq >= s for s in shift_set}             # (N, E) bool each

        def dilated_causal_conv(inp, w_ref, lidx, bias, d):
            taps = []
            for k in range(K):
                shift = (K - 1 - k) * d
                if shift == 0:
                    taps.append(inp)
                elif shift >= S:                                  # receptive field entirely before t=0
                    taps.append(jnp.zeros_like(inp))
                else:
                    rolled = pltpu.roll(inp, shift, axis=0)       # XLU sublane rotation, in-register
                    taps.append(jnp.where(masks[shift], rolled, 0.0))
            xk = jnp.concatenate(taps, axis=-1)                   # (N, K*E) lane concat
            w = w_ref[lidx]                                       # (K*E, E)
            if mm_dtype != jnp.float32:
                xk = xk.astype(mm_dtype)
                w = w.astype(mm_dtype)
            return jnp.dot(xk, w, preferred_element_type=jnp.float32) + bias

        def layer_norm_relu(h, gamma, beta):
            # two-pass centered LayerNorm (biased variance, eps=1e-8) to match torch numerics
            mean = jnp.sum(h, axis=-1, keepdims=True) * inv_e
            c = h - mean
            var = jnp.sum(c * c, axis=-1, keepdims=True) * inv_e
            y = c * jax.lax.rsqrt(var + eps) * gamma + beta
            return jnp.maximum(y, 0.0)                            # ReLU

        h = x_ref[0].astype(jnp.float32)                          # (N, E)
        # Static unrolled layer loop (L is small here).
        # TODO(synk): for deep dilation stacks switch to lax.fori_loop over the stacked
        # layer axis (weights already carry a leading layer dim) to bound vreg live ranges.
        for l, d in enumerate(dilations):
            a1 = layer_norm_relu(dilated_causal_conv(h, w1_ref, l, b1_ref[l], d),
                                 g1_ref[l], be1_ref[l])
            a2 = layer_norm_relu(dilated_causal_conv(a1, w2_ref, l, b2_ref[l], 2 * d),
                                 g2_ref[l], be2_ref[l])
            h = a2 + h                                            # residual connection (block b)

        # last position of every sequence: one store + a static stride-S row slice,
        # fused with the final Linear so only (bt, Eo) leaves the kernel.
        hbuf_ref[...] = h
        last = hbuf_ref[pl.ds(S - 1, bt, stride=S), :]            # rows S-1, 2S-1, ... -> (bt, E)
        fw = fw_ref[...]
        if mm_dtype != jnp.float32:
            last = last.astype(mm_dtype)
            fw = fw.astype(mm_dtype)
        out = jnp.dot(last, fw, preferred_element_type=jnp.float32) + fb_ref[...]
        o_ref[0] = out.astype(o_ref.dtype)

    return kernel


def nextitnet_forward(params, item_seq, dilations, kernel_size,
                      matmul_dtype=jnp.float32, tile_budget_bytes=8 * 1024 * 1024):
    B, S = item_seq.shape
    E = params['emb'].shape[1]
    Eo = params['final_w'].shape[0]
    K = kernel_size
    L = len(dilations)

    # embedding lookup (gather) is glue in plain JAX
    x = jnp.take(params['emb'], item_seq, axis=0)                 # (B, S, E)

    bt = _pick_batch_tile(B, S, E, tile_budget_bytes)
    nb = B // bt
    N = bt * S
    x3 = x.reshape(nb, N, E)                                      # leading batch-tile axis

    # Conv weights pre-reshaped to (L, K*E, E): each conv is one matmul in the kernel.
    w1c = params['W1'].reshape(L, K * E, E)
    w2c = params['W2'].reshape(L, K * E, E)
    fw_t = params['final_w'].T                                    # (E_in, E_out): torch Linear x @ W^T
    if matmul_dtype != jnp.float32:                               # bf16 weights: half the VMEM/DMA
        w1c = w1c.astype(matmul_dtype)
        w2c = w2c.astype(matmul_dtype)
        fw_t = fw_t.astype(matmul_dtype)

    kernel = _make_nextitnet_kernel(tuple(dilations), K, S, E, Eo, bt, matmul_dtype)

    # Generation-aware VMEM budgeting: double-buffered weights + activations + scratch,
    # capped at 64 MiB so the limit is valid on v5e / v6e / v7x alike.
    def _nbytes(a):
        return a.size * a.dtype.itemsize
    weight_bytes = sum(_nbytes(a) for a in (w1c, params['B1'], params['G1'], params['Be1'],
                                            w2c, params['B2'], params['G2'], params['Be2'],
                                            fw_t, params['final_b']))
    act_bytes = (N * E + bt * Eo) * 4
    footprint = 2 * weight_bytes + 2 * act_bytes + N * E * 4
    vmem_limit = int(min(64 * 2 ** 20, max(32 * 2 ** 20, 2 * footprint)))

    c3 = lambda b: (0, 0, 0)
    c2 = lambda b: (0, 0)

    out3 = pl.pallas_call(
        kernel,
        out_shape=jax.ShapeDtypeStruct((nb, bt, Eo), jnp.float32),
        grid=(nb,),
        in_specs=[
            pl.BlockSpec((1, N, E), lambda b: (b, 0, 0)),         # activations: one batch tile
            pl.BlockSpec((L, K * E, E), c3),                      # conv1 weights (all layers)
            pl.BlockSpec((L, 1, E), c3),                          # conv1 bias
            pl.BlockSpec((L, 1, E), c3),                          # ln1 gamma
            pl.BlockSpec((L, 1, E), c3),                          # ln1 beta
            pl.BlockSpec((L, K * E, E), c3),                      # conv2 weights
            pl.BlockSpec((L, 1, E), c3),                          # conv2 bias
            pl.BlockSpec((L, 1, E), c3),                          # ln2 gamma
            pl.BlockSpec((L, 1, E), c3),                          # ln2 beta
            pl.BlockSpec((E, Eo), c2),                            # final linear weight (transposed)
            pl.BlockSpec((1, Eo), c2),                            # final linear bias
        ],
        out_specs=pl.BlockSpec((1, bt, Eo), lambda b: (b, 0, 0)),
        scratch_shapes=[pltpu.VMEM((N, E), jnp.float32)],         # last-row strided-read staging
        compiler_params=pltpu.CompilerParams(
            dimension_semantics=("parallel",),                    # megacore / dual-TC ready
            vmem_limit_bytes=vmem_limit,
        ),
    )(x3, w1c, params['B1'], params['G1'], params['Be1'],
      w2c, params['B2'], params['G2'], params['Be2'], fw_t, params['final_b'])

    return out3.reshape(B, Eo)


# ------------------------------------ params ------------------------------------------

def init_params(key, item_num, E, dilations, kernel_size):
    L = len(dilations)
    K = kernel_size
    keys = jax.random.split(key, 2 + 4 * L)
    stdv = (1.0 / item_num) ** 0.5
    emb = jax.random.uniform(keys[0], (item_num + 1, E), jnp.float32, -stdv, stdv)
    emb = emb.at[0].set(0.0)                                      # padding_idx=0
    bound = (1.0 / (E * K)) ** 0.5                                # torch Conv2d default init bound
    W1, B1, W2, B2 = [], [], [], []
    ki = 1
    for _ in range(L):
        W1.append(jax.random.uniform(keys[ki], (K, E, E), jnp.float32, -bound, bound)); ki += 1
        B1.append(jax.random.uniform(keys[ki], (1, E), jnp.float32, -bound, bound)); ki += 1
        W2.append(jax.random.uniform(keys[ki], (K, E, E), jnp.float32, -bound, bound)); ki += 1
        B2.append(jax.random.uniform(keys[ki], (1, E), jnp.float32, -bound, bound)); ki += 1
    params = dict(
        emb=emb,
        W1=jnp.stack(W1), B1=jnp.stack(B1),
        G1=jnp.ones((L, 1, E), jnp.float32), Be1=jnp.zeros((L, 1, E), jnp.float32),
        W2=jnp.stack(W2), B2=jnp.stack(B2),
        G2=jnp.ones((L, 1, E), jnp.float32), Be2=jnp.zeros((L, 1, E), jnp.float32),
    )
    std = (2.0 / (E + E)) ** 0.5                                  # xavier_normal_
    params['final_w'] = jax.random.normal(keys[-1], (E, E), jnp.float32) * std  # (E_out, E_in)
    params['final_b'] = jnp.full((1, E), 0.1, jnp.float32)        # constant_(bias, 0.1)
    return params


# ------------------------------- pure-JAX reference ------------------------------------

def reference_forward(params, item_seq, dilations, kernel_size):
    K = kernel_size
    x = jnp.take(params['emb'], item_seq, axis=0)

    def ln(h, g, b):
        m = jnp.mean(h, -1, keepdims=True)
        v = jnp.mean((h - m) ** 2, -1, keepdims=True)
        return (h - m) * jax.lax.rsqrt(v + 1e-8) * g + b

    def conv(inp, w, b, d):
        Bb, S, E = inp.shape
        pad = (K - 1) * d
        xp = jnp.pad(inp, ((0, 0), (pad, 0), (0, 0)))
        out = jnp.zeros((Bb, S, E), jnp.float32) + b
        for k in range(K):
            out = out + jnp.einsum('bse,eo->bso', xp[:, k * d:k * d + S, :], w[k])
        return out

    for l, d in enumerate(dilations):
        h1 = jax.nn.relu(ln(conv(x, params['W1'][l], params['B1'][l], d),
                            params['G1'][l], params['Be1'][l]))
        h2 = jax.nn.relu(ln(conv(h1, params['W2'][l], params['B2'][l], 2 * d),
                            params['G2'][l], params['Be2'][l]))
        x = h2 + x
    hidden = x[:, -1, :]
    return hidden @ params['final_w'].T + params['final_b']


# TODO(synk): BPRLoss/RegLoss and the training/eval loops are not part of forward();
# only the forward pass is implemented.

if __name__ == "__main__":
    key = jax.random.PRNGKey(0)
    item_num, E, S, B = 60, 32, 16, 4
    kernel_size = 3
    block_num = 2
    dilations = [1, 2] * block_num   # dilations '1@2' * block_num

    pkey, skey = jax.random.split(key)
    params = init_params(pkey, item_num, E, dilations, kernel_size)
    item_seq = jax.random.randint(skey, (B, S), 0, item_num + 1, dtype=jnp.int32)

    out = jax.block_until_ready(nextitnet_forward(params, item_seq, dilations, kernel_size))
    assert out.shape == (B, E)

    ref = reference_forward(params, item_seq, dilations, kernel_size)
    assert jnp.allclose(out, ref, atol=1e-4, rtol=1e-4), float(jnp.max(jnp.abs(out - ref)))

    print("KERNEL_OK")
</pallas_src>

<mosaic_0001>
module attributes {stable_mosaic.version = 11 : i64} {
  func.func @kernel(%arg0: i32, %arg1: memref<1x32x32xf32, #tpu.memory_space<vmem>>, %arg2: memref<4x96x32xf32, #tpu.memory_space<vmem>>, %arg3: memref<4x1x32xf32, #tpu.memory_space<vmem>>, %arg4: memref<4x1x32xf32, #tpu.memory_space<vmem>>, %arg5: memref<4x1x32xf32, #tpu.memory_space<vmem>>, %arg6: memref<4x96x32xf32, #tpu.memory_space<vmem>>, %arg7: memref<4x1x32xf32, #tpu.memory_space<vmem>>, %arg8: memref<4x1x32xf32, #tpu.memory_space<vmem>>, %arg9: memref<4x1x32xf32, #tpu.memory_space<vmem>>, %arg10: memref<32x32xf32, #tpu.memory_space<vmem>>, %arg11: memref<1x32xf32, #tpu.memory_space<vmem>>, %arg12: memref<1x2x32xf32, #tpu.memory_space<vmem>>, %arg13: memref<32x32xf32, #tpu.memory_space<vmem>>) attributes {dimension_semantics = [#tpu.dimension_semantics<parallel>], iteration_bounds = array<i64: 2>, scalar_prefetch = 0 : i64, scratch_operands = 1 : i64, tpu.core_type = #tpu.core_type<tc>, window_params = [{transform_indices = @transform_0, window_bounds = array<i64: 1, 32, 32>}, {pipeline_mode = #tpu.pipeline_mode<synchronous>, transform_indices = @transform_1, window_bounds = array<i64: 4, 96, 32>}, {pipeline_mode = #tpu.pipeline_mode<synchronous>, transform_indices = @transform_2, window_bounds = array<i64: 4, 1, 32>}, {pipeline_mode = #tpu.pipeline_mode<synchronous>, transform_indices = @transform_3, window_bounds = array<i64: 4, 1, 32>}, {pipeline_mode = #tpu.pipeline_mode<synchronous>, transform_indices = @transform_4, window_bounds = array<i64: 4, 1, 32>}, {pipeline_mode = #tpu.pipeline_mode<synchronous>, transform_indices = @transform_5, window_bounds = array<i64: 4, 96, 32>}, {pipeline_mode = #tpu.pipeline_mode<synchronous>, transform_indices = @transform_6, window_bounds = array<i64: 4, 1, 32>}, {pipeline_mode = #tpu.pipeline_mode<synchronous>, transform_indices = @transform_7, window_bounds = array<i64: 4, 1, 32>}, {pipeline_mode = #tpu.pipeline_mode<synchronous>, transform_indices = @transform_8, window_bounds = array<i64: 4, 1, 32>}, {pipeline_mode = #tpu.pipeline_mode<synchronous>, transform_indices = @transform_9, window_bounds = array<i64: 32, 32>}, {pipeline_mode = #tpu.pipeline_mode<synchronous>, transform_indices = @transform_10, window_bounds = array<i64: 1, 32>}, {transform_indices = @transform_11, window_bounds = array<i64: 1, 2, 32>}]} {
    %0 = tpu.iota {dimensions = array<i32: 0>} : vector<32x32xi32>
    %c15_i32 = arith.constant 15 : i32
    %1 = vector.broadcast %c15_i32 : i32 to vector<32x32xi32>
    %2 = arith.andi %0, %1 : vector<32x32xi32>
    %c1_i32 = arith.constant 1 : i32
    %3 = vector.broadcast %c1_i32 : i32 to vector<32x32xi32>
    %4 = arith.cmpi sge, %2, %3 : vector<32x32xi32>
    %c2_i32 = arith.constant 2 : i32
    %5 = vector.broadcast %c2_i32 : i32 to vector<32x32xi32>
    %6 = arith.cmpi sge, %2, %5 : vector<32x32xi32>
    %c4_i32 = arith.constant 4 : i32
    %7 = vector.broadcast %c4_i32 : i32 to vector<32x32xi32>
    %8 = arith.cmpi sge, %2, %7 : vector<32x32xi32>
    %c8_i32 = arith.constant 8 : i32
    %9 = vector.broadcast %c8_i32 : i32 to vector<32x32xi32>
    %10 = arith.cmpi sge, %2, %9 : vector<32x32xi32>
    %c0 = arith.constant 0 : index
    %c0_0 = arith.constant 0 : index
    %c0_1 = arith.constant 0 : index
    %11 = vector.load %arg1[%c0, %c0_0, %c0_1] : memref<1x32x32xf32, #tpu.memory_space<vmem>>, vector<1x32x32xf32>
    %12 = vector.shape_cast %11 : vector<1x32x32xf32> to vector<32x32xf32>
    %c0_2 = arith.constant 0 : index
    %c0_3 = arith.constant 0 : index
    %c0_4 = arith.constant 0 : index
    %13 = vector.load %arg3[%c0_2, %c0_3, %c0_4] : memref<4x1x32xf32, #tpu.memory_space<vmem>>, vector<1x1x32xf32>
    %14 = vector.shape_cast %13 : vector<1x1x32xf32> to vector<1x32xf32>
    %c2_i32_5 = arith.constant 2 : i32
    %15 = tpu.dynamic_rotate %12 by %c2_i32_5 dim 0 : vector<32x32xf32>, i32 -> vector<32x32xf32>
    %cst = arith.constant 0.000000e+00 : f32
    %16 = vector.broadcast %cst : f32 to vector<32x32xf32>
    %17 = arith.select %6, %15, %16 : vector<32x32xi1>, vector<32x32xf32>
    %c1_i32_6 = arith.constant 1 : i32
    %18 = tpu.dynamic_rotate %12 by %c1_i32_6 dim 0 : vector<32x32xf32>, i32 -> vector<32x32xf32>
    %cst_7 = arith.constant 0.000000e+00 : f32
    %19 = vector.broadcast %cst_7 : f32 to vector<32x32xf32>
    %20 = arith.select %4, %18, %19 : vector<32x32xi1>, vector<32x32xf32>
    %21 = tpu.concatenate %17, %20, %12 in 1 : vector<32x32xf32>, vector<32x32xf32>, vector<32x32xf32> -> vector<32x96xf32>
    %c0_8 = arith.constant 0 : index
    %c0_9 = arith.constant 0 : index
    %c0_10 = arith.constant 0 : index
    %22 = vector.load %arg2[%c0_8, %c0_9, %c0_10] : memref<4x96x32xf32, #tpu.memory_space<vmem>>, vector<1x96x32xf32>
    %23 = vector.shape_cast %22 : vector<1x96x32xf32> to vector<96x32xf32>
    %cst_11 = arith.constant dense<0.000000e+00> : vector<32x32xf32>
    %24 = tpu.matmul %21, %23, %cst_11 {dimension_numbers = #tpu.dot_dimension_numbers<[1], [0], [0], [1], [0, 0, 1, 1], [], []>} : vector<32x96xf32>, vector<96x32xf32>, vector<32x32xf32> -> vector<32x32xf32>
    %25 = vector.broadcast %14 : vector<1x32xf32> to vector<32x32xf32>
    %26 = arith.addf %24, %25 : vector<32x32xf32>
    %c0_12 = arith.constant 0 : index
    %c0_13 = arith.constant 0 : index
    %c0_14 = arith.constant 0 : index
    %27 = vector.load %arg4[%c0_12, %c0_13, %c0_14] : memref<4x1x32xf32, #tpu.memory_space<vmem>>, vector<1x1x32xf32>
    %28 = vector.shape_cast %27 : vector<1x1x32xf32> to vector<1x32xf32>
    %c0_15 = arith.constant 0 : index
    %c0_16 = arith.constant 0 : index
    %c0_17 = arith.constant 0 : index
    %29 = vector.load %arg5[%c0_15, %c0_16, %c0_17] : memref<4x1x32xf32, #tpu.memory_space<vmem>>, vector<1x1x32xf32>
    %30 = vector.shape_cast %29 : vector<1x1x32xf32> to vector<1x32xf32>
    %cst_18 = arith.constant dense<0.000000e+00> : vector<32xf32>
    %31 = vector.multi_reduction <add>, %26, %cst_18 [1] : vector<32x32xf32> to vector<32xf32>
    %32 = vector.shape_cast %31 : vector<32xf32> to vector<32x1xf32>
    %cst_19 = arith.constant 3.125000e-02 : f32
    %33 = vector.broadcast %cst_19 : f32 to vector<32x1xf32>
    %34 = arith.mulf %32, %33 : vector<32x1xf32>
    %35 = vector.broadcast %34 : vector<32x1xf32> to vector<32x32xf32>
    %36 = arith.subf %26, %35 : vector<32x32xf32>
    %37 = arith.mulf %36, %36 : vector<32x32xf32>
    %cst_20 = arith.constant dense<0.000000e+00> : vector<32xf32>
    %38 = vector.multi_reduction <add>, %37, %cst_20 [1] : vector<32x32xf32> to vector<32xf32>
    %39 = vector.shape_cast %38 : vector<32xf32> to vector<32x1xf32>
    %cst_21 = arith.constant 3.125000e-02 : f32
    %40 = vector.broadcast %cst_21 : f32 to vector<32x1xf32>
    %41 = arith.mulf %39, %40 : vector<32x1xf32>
    %cst_22 = arith.constant 9.99999993E-9 : f32
    %42 = vector.broadcast %cst_22 : f32 to vector<32x1xf32>
    %43 = arith.addf %41, %42 : vector<32x1xf32>
    %44 = math.rsqrt %43 : vector<32x1xf32>
    %45 = vector.broadcast %44 : vector<32x1xf32> to vector<32x32xf32>
    %46 = arith.mulf %36, %45 : vector<32x32xf32>
    %47 = vector.broadcast %28 : vector<1x32xf32> to vector<32x32xf32>
    %48 = arith.mulf %46, %47 : vector<32x32xf32>
    %49 = vector.broadcast %30 : vector<1x32xf32> to vector<32x32xf32>
    %50 = arith.addf %48, %49 : vector<32x32xf32>
    %cst_23 = arith.constant 0.000000e+00 : f32
    %51 = vector.broadcast %cst_23 : f32 to vector<32x32xf32>
    %52 = arith.maximumf %50, %51 : vector<32x32xf32>
    %c0_24 = arith.constant 0 : index
    %c0_25 = arith.constant 0 : index
    %c0_26 = arith.constant 0 : index
    %53 = vector.load %arg7[%c0_24, %c0_25, %c0_26] : memref<4x1x32xf32, #tpu.memory_space<vmem>>, vector<1x1x32xf32>
    %54 = vector.shape_cast %53 : vector<1x1x32xf32> to vector<1x32xf32>
    %c4_i32_27 = arith.constant 4 : i32
    %55 = tpu.dynamic_rotate %52 by %c4_i32_27 dim 0 : vector<32x32xf32>, i32 -> vector<32x32xf32>
    %cst_28 = arith.constant 0.000000e+00 : f32
    %56 = vector.broadcast %cst_28 : f32 to vector<32x32xf32>
    %57 = arith.select %8, %55, %56 : vector<32x32xi1>, vector<32x32xf32>
    %c2_i32_29 = arith.constant 2 : i32
    %58 = tpu.dynamic_rotate %52 by %c2_i32_29 dim 0 : vector<32x32xf32>, i32 -> vector<32x32xf32>
    %cst_30 = arith.constant 0.000000e+00 : f32
    %59 = vector.broadcast %cst_30 : f32 to vector<32x32xf32>
    %60 = arith.select %6, %58, %59 : vector<32x32xi1>, vector<32x32xf32>
    %61 = tpu.concatenate %57, %60, %52 in 1 : vector<32x32xf32>, vector<32x32xf32>, vector<32x32xf32> -> vector<32x96xf32>
    %c0_31 = arith.constant 0 : index
    %c0_32 = arith.constant 0 : index
    %c0_33 = arith.constant 0 : index
    %62 = vector.load %arg6[%c0_31, %c0_32, %c0_33] : memref<4x96x32xf32, #tpu.memory_space<vmem>>, vector<1x96x32xf32>
    %63 = vector.shape_cast %62 : vector<1x96x32xf32> to vector<96x32xf32>
    %cst_34 = arith.constant dense<0.000000e+00> : vector<32x32xf32>
    %64 = tpu.matmul %61, %63, %cst_34 {dimension_numbers = #tpu.dot_dimension_numbers<[1], [0], [0], [1], [0, 0, 1, 1], [], []>} : vector<32x96xf32>, vector<96x32xf32>, vector<32x32xf32> -> vector<32x32xf32>
    %65 = vector.broadcast %54 : vector<1x32xf32> to vector<32x32xf32>
    %66 = arith.addf %64, %65 : vector<32x32xf32>
    %c0_35 = arith.constant 0 : index
    %c0_36 = arith.constant 0 : index
    %c0_37 = arith.constant 0 : index
    %67 = vector.load %arg8[%c0_35, %c0_36, %c0_37] : memref<4x1x32xf32, #tpu.memory_space<vmem>>, vector<1x1x32xf32>
    %68 = vector.shape_cast %67 : vector<1x1x32xf32> to vector<1x32xf32>
    %c0_38 = arith.constant 0 : index
    %c0_39 = arith.constant 0 : index
    %c0_40 = arith.constant 0 : index
    %69 = vector.load %arg9[%c0_38, %c0_39, %c0_40] : memref<4x1x32xf32, #tpu.memory_space<vmem>>, vector<1x1x32xf32>
    %70 = vector.shape_cast %69 : vector<1x1x32xf32> to vector<1x32xf32>
    %cst_41 = arith.constant dense<0.000000e+00> : vector<32xf32>
    %71 = vector.multi_reduction <add>, %66, %cst_41 [1] : vector<32x32xf32> to vector<32xf32>
    %72 = vector.shape_cast %71 : vector<32xf32> to vector<32x1xf32>
    %cst_42 = arith.constant 3.125000e-02 : f32
    %73 = vector.broadcast %cst_42 : f32 to vector<32x1xf32>
    %74 = arith.mulf %72, %73 : vector<32x1xf32>
    %75 = vector.broadcast %74 : vector<32x1xf32> to vector<32x32xf32>
    %76 = arith.subf %66, %75 : vector<32x32xf32>
    %77 = arith.mulf %76, %76 : vector<32x32xf32>
    %cst_43 = arith.constant dense<0.000000e+00> : vector<32xf32>
    %78 = vector.multi_reduction <add>, %77, %cst_43 [1] : vector<32x32xf32> to vector<32xf32>
    %79 = vector.shape_cast %78 : vector<32xf32> to vector<32x1xf32>
    %cst_44 = arith.constant 3.125000e-02 : f32
    %80 = vector.broadcast %cst_44 : f32 to vector<32x1xf32>
    %81 = arith.mulf %79, %80 : vector<32x1xf32>
    %cst_45 = arith.constant 9.99999993E-9 : f32
    %82 = vector.broadcast %cst_45 : f32 to vector<32x1xf32>
    %83 = arith.addf %81, %82 : vector<32x1xf32>
    %84 = math.rsqrt %83 : vector<32x1xf32>
    %85 = vector.broadcast %84 : vector<32x1xf32> to vector<32x32xf32>
    %86 = arith.mulf %76, %85 : vector<32x32xf32>
    %87 = vector.broadcast %68 : vector<1x32xf32> to vector<32x32xf32>
    %88 = arith.mulf %86, %87 : vector<32x32xf32>
    %89 = vector.broadcast %70 : vector<1x32xf32> to vector<32x32xf32>
    %90 = arith.addf %88, %89 : vector<32x32xf32>
    %cst_46 = arith.constant 0.000000e+00 : f32
    %91 = vector.broadcast %cst_46 : f32 to vector<32x32xf32>
    %92 = arith.maximumf %90, %91 : vector<32x32xf32>
    %93 = arith.addf %92, %12 : vector<32x32xf32>
    %c1 = arith.constant 1 : index
    %c0_47 = arith.constant 0 : index
    %c0_48 = arith.constant 0 : index
    %94 = vector.load %arg3[%c1, %c0_47, %c0_48] : memref<4x1x32xf32, #tpu.memory_space<vmem>>, vector<1x1x32xf32>
    %95 = vector.shape_cast %94 : vector<1x1x32xf32> to vector<1x32xf32>
    %c4_i32_49 = arith.constant 4 : i32
    %96 = tpu.dynamic_rotate %93 by %c4_i32_49 dim 0 : vector<32x32xf32>, i32 -> vector<32x32xf32>
    %cst_50 = arith.constant 0.000000e+00 : f32
    %97 = vector.broadcast %cst_50 : f32 to vector<32x32xf32>
    %98 = arith.select %8, %96, %97 : vector<32x32xi1>, vector<32x32xf32>
    %c2_i32_51 = arith.constant 2 : i32
    %99 = tpu.dynamic_rotate %93 by %c2_i32_51 dim 0 : vector<32x32xf32>, i32 -> vector<32x32xf32>
    %cst_52 = arith.constant 0.000000e+00 : f32
    %100 = vector.broadcast %cst_52 : f32 to vector<32x32xf32>
    %101 = arith.select %6, %99, %100 : vector<32x32xi1>, vector<32x32xf32>
    %102 = tpu.concatenate %98, %101, %93 in 1 : vector<32x32xf32>, vector<32x32xf32>, vector<32x32xf32> -> vector<32x96xf32>
    %c1_53 = arith.constant 1 : index
    %c0_54 = arith.constant 0 : index
    %c0_55 = arith.constant 0 : index
    %103 = vector.load %arg2[%c1_53, %c0_54, %c0_55] : memref<4x96x32xf32, #tpu.memory_space<vmem>>, vector<1x96x32xf32>
    %104 = vector.shape_cast %103 : vector<1x96x32xf32> to vector<96x32xf32>
    %cst_56 = arith.constant dense<0.000000e+00> : vector<32x32xf32>
    %105 = tpu.matmul %102, %104, %cst_56 {dimension_numbers = #tpu.dot_dimension_numbers<[1], [0], [0], [1], [0, 0, 1, 1], [], []>} : vector<32x96xf32>, vector<96x32xf32>, vector<32x32xf32> -> vector<32x32xf32>
    %106 = vector.broadcast %95 : vector<1x32xf32> to vector<32x32xf32>
    %107 = arith.addf %105, %106 : vector<32x32xf32>
    %c1_57 = arith.constant 1 : index
    %c0_58 = arith.constant 0 : index
    %c0_59 = arith.constant 0 : index
    %108 = vector.load %arg4[%c1_57, %c0_58, %c0_59] : memref<4x1x32xf32, #tpu.memory_space<vmem>>, vector<1x1x32xf32>
    %109 = vector.shape_cast %108 : vector<1x1x32xf32> to vector<1x32xf32>
    %c1_60 = arith.constant 1 : index
    %c0_61 = arith.constant 0 : index
    %c0_62 = arith.constant 0 : index
    %110 = vector.load %arg5[%c1_60, %c0_61, %c0_62] : memref<4x1x32xf32, #tpu.memory_space<vmem>>, vector<1x1x32xf32>
    %111 = vector.shape_cast %110 : vector<1x1x32xf32> to vector<1x32xf32>
    %cst_63 = arith.constant dense<0.000000e+00> : vector<32xf32>
    %112 = vector.multi_reduction <add>, %107, %cst_63 [1] : vector<32x32xf32> to vector<32xf32>
    %113 = vector.shape_cast %112 : vector<32xf32> to vector<32x1xf32>
    %cst_64 = arith.constant 3.125000e-02 : f32
    %114 = vector.broadcast %cst_64 : f32 to vector<32x1xf32>
    %115 = arith.mulf %113, %114 : vector<32x1xf32>
    %116 = vector.broadcast %115 : vector<32x1xf32> to vector<32x32xf32>
    %117 = arith.subf %107, %116 : vector<32x32xf32>
    %118 = arith.mulf %117, %117 : vector<32x32xf32>
    %cst_65 = arith.constant dense<0.000000e+00> : vector<32xf32>
    %119 = vector.multi_reduction <add>, %118, %cst_65 [1] : vector<32x32xf32> to vector<32xf32>
    %120 = vector.shape_cast %119 : vector<32xf32> to vector<32x1xf32>
    %cst_66 = arith.constant 3.125000e-02 : f32
    %121 = vector.broadcast %cst_66 : f32 to vector<32x1xf32>
    %122 = arith.mulf %120, %121 : vector<32x1xf32>
    %cst_67 = arith.constant 9.99999993E-9 : f32
    %123 = vector.broadcast %cst_67 : f32 to vector<32x1xf32>
    %124 = arith.addf %122, %123 : vector<32x1xf32>
    %125 = math.rsqrt %124 : vector<32x1xf32>
    %126 = vector.broadcast %125 : vector<32x1xf32> to vector<32x32xf32>
    %127 = arith.mulf %117, %126 : vector<32x32xf32>
    %128 = vector.broadcast %109 : vector<1x32xf32> to vector<32x32xf32>
    %129 = arith.mulf %127, %128 : vector<32x32xf32>
    %130 = vector.broadcast %111 : vector<1x32xf32> to vector<32x32xf32>
    %131 = arith.addf %129, %130 : vector<32x32xf32>
    %cst_68 = arith.constant 0.000000e+00 : f32
    %132 = vector.broadcast %cst_68 : f32 to vector<32x32xf32>
    %133 = arith.maximumf %131, %132 : vector<32x32xf32>
    %c1_69 = arith.constant 1 : index
    %c0_70 = arith.constant 0 : index
    %c0_71 = arith.constant 0 : index
    %134 = vector.load %arg7[%c1_69, %c0_70, %c0_71] : memref<4x1x32xf32, #tpu.memory_space<vmem>>, vector<1x1x32xf32>
    %135 = vector.shape_cast %134 : vector<1x1x32xf32> to vector<1x32xf32>
    %c8_i32_72 = arith.constant 8 : i32
    %136 = tpu.dynamic_rotate %133 by %c8_i32_72 dim 0 : vector<32x32xf32>, i32 -> vector<32x32xf32>
    %cst_73 = arith.constant 0.000000e+00 : f32
    %137 = vector.broadcast %cst_73 : f32 to vector<32x32xf32>
    %138 = arith.select %10, %136, %137 : vector<32x32xi1>, vector<32x32xf32>
    %c4_i32_74 = arith.constant 4 : i32
    %139 = tpu.dynamic_rotate %133 by %c4_i32_74 dim 0 : vector<32x32xf32>, i32 -> vector<32x32xf32>
    %cst_75 = arith.constant 0.000000e+00 : f32
    %140 = vector.broadcast %cst_75 : f32 to vector<32x32xf32>
    %141 = arith.select %8, %139, %140 : vector<32x32xi1>, vector<32x32xf32>
    %142 = tpu.concatenate %138, %141, %133 in 1 : vector<32x32xf32>, vector<32x32xf32>, vector<32x32xf32> -> vector<32x96xf32>
    %c1_76 = arith.constant 1 : index
    %c0_77 = arith.constant 0 : index
    %c0_78 = arith.constant 0 : index
    %143 = vector.load %arg6[%c1_76, %c0_77, %c0_78] : memref<4x96x32xf32, #tpu.memory_space<vmem>>, vector<1x96x32xf32>
    %144 = vector.shape_cast %143 : vector<1x96x32xf32> to vector<96x32xf32>
    %cst_79 = arith.constant dense<0.000000e+00> : vector<32x32xf32>
    %145 = tpu.matmul %142, %144, %cst_79 {dimension_numbers = #tpu.dot_dimension_numbers<[1], [0], [0], [1], [0, 0, 1, 1], [], []>} : vector<32x96xf32>, vector<96x32xf32>, vector<32x32xf32> -> vector<32x32xf32>
    %146 = vector.broadcast %135 : vector<1x32xf32> to vector<32x32xf32>
    %147 = arith.addf %145, %146 : vector<32x32xf32>
    %c1_80 = arith.constant 1 : index
    %c0_81 = arith.constant 0 : index
    %c0_82 = arith.constant 0 : index
    %148 = vector.load %arg8[%c1_80, %c0_81, %c0_82] : memref<4x1x32xf32, #tpu.memory_space<vmem>>, vector<1x1x32xf32>
    %149 = vector.shape_cast %148 : vector<1x1x32xf32> to vector<1x32xf32>
    %c1_83 = arith.constant 1 : index
    %c0_84 = arith.constant 0 : index
    %c0_85 = arith.constant 0 : index
    %150 = vector.load %arg9[%c1_83, %c0_84, %c0_85] : memref<4x1x32xf32, #tpu.memory_space<vmem>>, vector<1x1x32xf32>
    %151 = vector.shape_cast %150 : vector<1x1x32xf32> to vector<1x32xf32>
    %cst_86 = arith.constant dense<0.000000e+00> : vector<32xf32>
    %152 = vector.multi_reduction <add>, %147, %cst_86 [1] : vector<32x32xf32> to vector<32xf32>
    %153 = vector.shape_cast %152 : vector<32xf32> to vector<32x1xf32>
    %cst_87 = arith.constant 3.125000e-02 : f32
    %154 = vector.broadcast %cst_87 : f32 to vector<32x1xf32>
    %155 = arith.mulf %153, %154 : vector<32x1xf32>
    %156 = vector.broadcast %155 : vector<32x1xf32> to vector<32x32xf32>
    %157 = arith.subf %147, %156 : vector<32x32xf32>
    %158 = arith.mulf %157, %157 : vector<32x32xf32>
    %cst_88 = arith.constant dense<0.000000e+00> : vector<32xf32>
    %159 = vector.multi_reduction <add>, %158, %cst_88 [1] : vector<32x32xf32> to vector<32xf32>
    %160 = vector.shape_cast %159 : vector<32xf32> to vector<32x1xf32>
    %cst_89 = arith.constant 3.125000e-02 : f32
    %161 = vector.broadcast %cst_89 : f32 to vector<32x1xf32>
    %162 = arith.mulf %160, %161 : vector<32x1xf32>
    %cst_90 = arith.constant 9.99999993E-9 : f32
    %163 = vector.broadcast %cst_90 : f32 to vector<32x1xf32>
    %164 = arith.addf %162, %163 : vector<32x1xf32>
    %165 = math.rsqrt %164 : vector<32x1xf32>
    %166 = vector.broadcast %165 : vector<32x1xf32> to vector<32x32xf32>
    %167 = arith.mulf %157, %166 : vector<32x32xf32>
    %168 = vector.broadcast %149 : vector<1x32xf32> to vector<32x32xf32>
    %169 = arith.mulf %167, %168 : vector<32x32xf32>
    %170 = vector.broadcast %151 : vector<1x32xf32> to vector<32x32xf32>
    %171 = arith.addf %169, %170 : vector<32x32xf32>
    %cst_91 = arith.constant 0.000000e+00 : f32
    %172 = vector.broadcast %cst_91 : f32 to vector<32x32xf32>
    %173 = arith.maximumf %171, %172 : vector<32x32xf32>
    %174 = arith.addf %173, %93 : vector<32x32xf32>
    %c2 = arith.constant 2 : index
    %c0_92 = arith.constant 0 : index
    %c0_93 = arith.constant 0 : index
    %175 = vector.load %arg3[%c2, %c0_92, %c0_93] : memref<4x1x32xf32, #tpu.memory_space<vmem>>, vector<1x1x32xf32>
    %176 = vector.shape_cast %175 : vector<1x1x32xf32> to vector<1x32xf32>
    %c2_i32_94 = arith.constant 2 : i32
    %177 = tpu.dynamic_rotate %174 by %c2_i32_94 dim 0 : vector<32x32xf32>, i32 -> vector<32x32xf32>
    %cst_95 = arith.constant 0.000000e+00 : f32
    %178 = vector.broadcast %cst_95 : f32 to vector<32x32xf32>
    %179 = arith.select %6, %177, %178 : vector<32x32xi1>, vector<32x32xf32>
    %c1_i32_96 = arith.constant 1 : i32
    %180 = tpu.dynamic_rotate %174 by %c1_i32_96 dim 0 : vector<32x32xf32>, i32 -> vector<32x32xf32>
    %cst_97 = arith.constant 0.000000e+00 : f32
    %181 = vector.broadcast %cst_97 : f32 to vector<32x32xf32>
    %182 = arith.select %4, %180, %181 : vector<32x32xi1>, vector<32x32xf32>
    %183 = tpu.concatenate %179, %182, %174 in 1 : vector<32x32xf32>, vector<32x32xf32>, vector<32x32xf32> -> vector<32x96xf32>
    %c2_98 = arith.constant 2 : index
    %c0_99 = arith.constant 0 : index
    %c0_100 = arith.constant 0 : index
    %184 = vector.load %arg2[%c2_98, %c0_99, %c0_100] : memref<4x96x32xf32, #tpu.memory_space<vmem>>, vector<1x96x32xf32>
    %185 = vector.shape_cast %184 : vector<1x96x32xf32> to vector<96x32xf32>
    %cst_101 = arith.constant dense<0.000000e+00> : vector<32x32xf32>
    %186 = tpu.matmul %183, %185, %cst_101 {dimension_numbers = #tpu.dot_dimension_numbers<[1], [0], [0], [1], [0, 0, 1, 1], [], []>} : vector<32x96xf32>, vector<96x32xf32>, vector<32x32xf32> -> vector<32x32xf32>
    %187 = vector.broadcast %176 : vector<1x32xf32> to vector<32x32xf32>
    %188 = arith.addf %186, %187 : vector<32x32xf32>
    %c2_102 = arith.constant 2 : index
    %c0_103 = arith.constant 0 : index
    %c0_104 = arith.constant 0 : index
    %189 = vector.load %arg4[%c2_102, %c0_103, %c0_104] : memref<4x1x32xf32, #tpu.memory_space<vmem>>, vector<1x1x32xf32>
    %190 = vector.shape_cast %189 : vector<1x1x32xf32> to vector<1x32xf32>
    %c2_105 = arith.constant 2 : index
    %c0_106 = arith.constant 0 : index
    %c0_107 = arith.constant 0 : index
    %191 = vector.load %arg5[%c2_105, %c0_106, %c0_107] : memref<4x1x32xf32, #tpu.memory_space<vmem>>, vector<1x1x32xf32>
    %192 = vector.shape_cast %191 : vector<1x1x32xf32> to vector<1x32xf32>
    %cst_108 = arith.constant dense<0.000000e+00> : vector<32xf32>
    %193 = vector.multi_reduction <add>, %188, %cst_108 [1] : vector<32x32xf32> to vector<32xf32>
    %194 = vector.shape_cast %193 : vector<32xf32> to vector<32x1xf32>
    %cst_109 = arith.constant 3.125000e-02 : f32
    %195 = vector.broadcast %cst_109 : f32 to vector<32x1xf32>
    %196 = arith.mulf %194, %195 : vector<32x1xf32>
    %197 = vector.broadcast %196 : vector<32x1xf32> to vector<32x32xf32>
    %198 = arith.subf %188, %197 : vector<32x32xf32>
    %199 = arith.mulf %198, %198 : vector<32x32xf32>
    %cst_110 = arith.constant dense<0.000000e+00> : vector<32xf32>
    %200 = vector.multi_reduction <add>, %199, %cst_110 [1] : vector<32x32xf32> to vector<32xf32>
    %201 = vector.shape_cast %200 : vector<32xf32> to vector<32x1xf32>
    %cst_111 = arith.constant 3.125000e-02 : f32
    %202 = vector.broadcast %cst_111 : f32 to vector<32x1xf32>
    %203 = arith.mulf %201, %202 : vector<32x1xf32>
    %cst_112 = arith.constant 9.99999993E-9 : f32
    %204 = vector.broadcast %cst_112 : f32 to vector<32x1xf32>
    %205 = arith.addf %203, %204 : vector<32x1xf32>
    %206 = math.rsqrt %205 : vector<32x1xf32>
    %207 = vector.broadcast %206 : vector<32x1xf32> to vector<32x32xf32>
    %208 = arith.mulf %198, %207 : vector<32x32xf32>
    %209 = vector.broadcast %190 : vector<1x32xf32> to vector<32x32xf32>
    %210 = arith.mulf %208, %209 : vector<32x32xf32>
    %211 = vector.broadcast %192 : vector<1x32xf32> to vector<32x32xf32>
    %212 = arith.addf %210, %211 : vector<32x32xf32>
    %cst_113 = arith.constant 0.000000e+00 : f32
    %213 = vector.broadcast %cst_113 : f32 to vector<32x32xf32>
    %214 = arith.maximumf %212, %213 : vector<32x32xf32>
    %c2_114 = arith.constant 2 : index
    %c0_115 = arith.constant 0 : index
    %c0_116 = arith.constant 0 : index
    %215 = vector.load %arg7[%c2_114, %c0_115, %c0_116] : memref<4x1x32xf32, #tpu.memory_space<vmem>>, vector<1x1x32xf32>
    %216 = vector.shape_cast %215 : vector<1x1x32xf32> to vector<1x32xf32>
    %c4_i32_117 = arith.constant 4 : i32
    %217 = tpu.dynamic_rotate %214 by %c4_i32_117 dim 0 : vector<32x32xf32>, i32 -> vector<32x32xf32>
    %cst_118 = arith.constant 0.000000e+00 : f32
    %218 = vector.broadcast %cst_118 : f32 to vector<32x32xf32>
    %219 = arith.select %8, %217, %218 : vector<32x32xi1>, vector<32x32xf32>
    %c2_i32_119 = arith.constant 2 : i32
    %220 = tpu.dynamic_rotate %214 by %c2_i32_119 dim 0 : vector<32x32xf32>, i32 -> vector<32x32xf32>
    %cst_120 = arith.constant 0.000000e+00 : f32
    %221 = vector.broadcast %cst_120 : f32 to vector<32x32xf32>
    %222 = arith.select %6, %220, %221 : vector<32x32xi1>, vector<32x32xf32>
    %223 = tpu.concatenate %219, %222, %214 in 1 : vector<32x32xf32>, vector<32x32xf32>, vector<32x32xf32> -> vector<32x96xf32>
    %c2_121 = arith.constant 2 : index
    %c0_122 = arith.constant 0 : index
    %c0_123 = arith.constant 0 : index
    %224 = vector.load %arg6[%c2_121, %c0_122, %c0_123] : memref<4x96x32xf32, #tpu.memory_space<vmem>>, vector<1x96x32xf32>
    %225 = vector.shape_cast %224 : vector<1x96x32xf32> to vector<96x32xf32>
    %cst_124 = arith.constant dense<0.000000e+00> : vector<32x32xf32>
    %226 = tpu.matmul %223, %225, %cst_124 {dimension_numbers = #tpu.dot_dimension_numbers<[1], [0], [0], [1], [0, 0, 1, 1], [], []>} : vector<32x96xf32>, vector<96x32xf32>, vector<32x32xf32> -> vector<32x32xf32>
    %227 = vector.broadcast %216 : vector<1x32xf32> to vector<32x32xf32>
    %228 = arith.addf %226, %227 : vector<32x32xf32>
    %c2_125 = arith.constant 2 : index
    %c0_126 = arith.constant 0 : index
    %c0_127 = arith.constant 0 : index
    %229 = vector.load %arg8[%c2_125, %c0_126, %c0_127] : memref<4x1x32xf32, #tpu.memory_space<vmem>>, vector<1x1x32xf32>
    %230 = vector.shape_cast %229 : vector<1x1x32xf32> to vector<1x32xf32>
    %c2_128 = arith.constant 2 : index
    %c0_129 = arith.constant 0 : index
    %c0_130 = arith.constant 0 : index
    %231 = vector.load %arg9[%c2_128, %c0_129, %c0_130] : memref<4x1x32xf32, #tpu.memory_space<vmem>>, vector<1x1x32xf32>
    %232 = vector.shape_cast %231 : vector<1x1x32xf32> to vector<1x32xf32>
    %cst_131 = arith.constant dense<0.000000e+00> : vector<32xf32>
    %233 = vector.multi_reduction <add>, %228, %cst_131 [1] : vector<32x32xf32> to vector<32xf32>
    %234 = vector.shape_cast %233 : vector<32xf32> to vector<32x1xf32>
    %cst_132 = arith.constant 3.125000e-02 : f32
    %235 = vector.broadcast %cst_132 : f32 to vector<32x1xf32>
    %236 = arith.mulf %234, %235 : vector<32x1xf32>
    %237 = vector.broadcast %236 : vector<32x1xf32> to vector<32x32xf32>
    %238 = arith.subf %228, %237 : vector<32x32xf32>
    %239 = arith.mulf %238, %238 : vector<32x32xf32>
    %cst_133 = arith.constant dense<0.000000e+00> : vector<32xf32>
    %240 = vector.multi_reduction <add>, %239, %cst_133 [1] : vector<32x32xf32> to vector<32xf32>
    %241 = vector.shape_cast %240 : vector<32xf32> to vector<32x1xf32>
    %cst_134 = arith.constant 3.125000e-02 : f32
    %242 = vector.broadcast %cst_134 : f32 to vector<32x1xf32>
    %243 = arith.mulf %241, %242 : vector<32x1xf32>
    %cst_135 = arith.constant 9.99999993E-9 : f32
    %244 = vector.broadcast %cst_135 : f32 to vector<32x1xf32>
    %245 = arith.addf %243, %244 : vector<32x1xf32>
    %246 = math.rsqrt %245 : vector<32x1xf32>
    %247 = vector.broadcast %246 : vector<32x1xf32> to vector<32x32xf32>
    %248 = arith.mulf %238, %247 : vector<32x32xf32>
    %249 = vector.broadcast %230 : vector<1x32xf32> to vector<32x32xf32>
    %250 = arith.mulf %248, %249 : vector<32x32xf32>
    %251 = vector.broadcast %232 : vector<1x32xf32> to vector<32x32xf32>
    %252 = arith.addf %250, %251 : vector<32x32xf32>
    %cst_136 = arith.constant 0.000000e+00 : f32
    %253 = vector.broadcast %cst_136 : f32 to vector<32x32xf32>
    %254 = arith.maximumf %252, %253 : vector<32x32xf32>
    %255 = arith.addf %254, %174 : vector<32x32xf32>
    %c3 = arith.constant 3 : index
    %c0_137 = arith.constant 0 : index
    %c0_138 = arith.constant 0 : index
    %256 = vector.load %arg3[%c3, %c0_137, %c0_138] : memref<4x1x32xf32, #tpu.memory_space<vmem>>, vector<1x1x32xf32>
    %257 = vector.shape_cast %256 : vector<1x1x32xf32> to vector<1x32xf32>
    %c4_i32_139 = arith.constant 4 : i32
    %258 = tpu.dynamic_rotate %255 by %c4_i32_139 dim 0 : vector<32x32xf32>, i32 -> vector<32x32xf32>
    %cst_140 = arith.constant 0.000000e+00 : f32
    %259 = vector.broadcast %cst_140 : f32 to vector<32x32xf32>
    %260 = arith.select %8, %258, %259 : vector<32x32xi1>, vector<32x32xf32>
    %c2_i32_141 = arith.constant 2 : i32
    %261 = tpu.dynamic_rotate %255 by %c2_i32_141 dim 0 : vector<32x32xf32>, i32 -> vector<32x32xf32>
    %cst_142 = arith.constant 0.000000e+00 : f32
    %262 = vector.broadcast %cst_142 : f32 to vector<32x32xf32>
    %263 = arith.select %6, %261, %262 : vector<32x32xi1>, vector<32x32xf32>
    %264 = tpu.concatenate %260, %263, %255 in 1 : vector<32x32xf32>, vector<32x32xf32>, vector<32x32xf32> -> vector<32x96xf32>
    %c3_143 = arith.constant 3 : index
    %c0_144 = arith.constant 0 : index
    %c0_145 = arith.constant 0 : index
    %265 = vector.load %arg2[%c3_143, %c0_144, %c0_145] : memref<4x96x32xf32, #tpu.memory_space<vmem>>, vector<1x96x32xf32>
    %266 = vector.shape_cast %265 : vector<1x96x32xf32> to vector<96x32xf32>
    %cst_146 = arith.constant dense<0.000000e+00> : vector<32x32xf32>
    %267 = tpu.matmul %264, %266, %cst_146 {dimension_numbers = #tpu.dot_dimension_numbers<[1], [0], [0], [1], [0, 0, 1, 1], [], []>} : vector<32x96xf32>, vector<96x32xf32>, vector<32x32xf32> -> vector<32x32xf32>
    %268 = vector.broadcast %257 : vector<1x32xf32> to vector<32x32xf32>
    %269 = arith.addf %267, %268 : vector<32x32xf32>
    %c3_147 = arith.constant 3 : index
    %c0_148 = arith.constant 0 : index
    %c0_149 = arith.constant 0 : index
    %270 = vector.load %arg4[%c3_147, %c0_148, %c0_149] : memref<4x1x32xf32, #tpu.memory_space<vmem>>, vector<1x1x32xf32>
    %271 = vector.shape_cast %270 : vector<1x1x32xf32> to vector<1x32xf32>
    %c3_150 = arith.constant 3 : index
    %c0_151 = arith.constant 0 : index
    %c0_152 = arith.constant 0 : index
    %272 = vector.load %arg5[%c3_150, %c0_151, %c0_152] : memref<4x1x32xf32, #tpu.memory_space<vmem>>, vector<1x1x32xf32>
    %273 = vector.shape_cast %272 : vector<1x1x32xf32> to vector<1x32xf32>
    %cst_153 = arith.constant dense<0.000000e+00> : vector<32xf32>
    %274 = vector.multi_reduction <add>, %269, %cst_153 [1] : vector<32x32xf32> to vector<32xf32>
    %275 = vector.shape_cast %274 : vector<32xf32> to vector<32x1xf32>
    %cst_154 = arith.constant 3.125000e-02 : f32
    %276 = vector.broadcast %cst_154 : f32 to vector<32x1xf32>
    %277 = arith.mulf %275, %276 : vector<32x1xf32>
    %278 = vector.broadcast %277 : vector<32x1xf32> to vector<32x32xf32>
    %279 = arith.subf %269, %278 : vector<32x32xf32>
    %280 = arith.mulf %279, %279 : vector<32x32xf32>
    %cst_155 = arith.constant dense<0.000000e+00> : vector<32xf32>
    %281 = vector.multi_reduction <add>, %280, %cst_155 [1] : vector<32x32xf32> to vector<32xf32>
    %282 = vector.shape_cast %281 : vector<32xf32> to vector<32x1xf32>
    %cst_156 = arith.constant 3.125000e-02 : f32
    %283 = vector.broadcast %cst_156 : f32 to vector<32x1xf32>
    %284 = arith.mulf %282, %283 : vector<32x1xf32>
    %cst_157 = arith.constant 9.99999993E-9 : f32
    %285 = vector.broadcast %cst_157 : f32 to vector<32x1xf32>
    %286 = arith.addf %284, %285 : vector<32x1xf32>
    %287 = math.rsqrt %286 : vector<32x1xf32>
    %288 = vector.broadcast %287 : vector<32x1xf32> to vector<32x32xf32>
    %289 = arith.mulf %279, %288 : vector<32x32xf32>
    %290 = vector.broadcast %271 : vector<1x32xf32> to vector<32x32xf32>
    %291 = arith.mulf %289, %290 : vector<32x32xf32>
    %292 = vector.broadcast %273 : vector<1x32xf32> to vector<32x32xf32>
    %293 = arith.addf %291, %292 : vector<32x32xf32>
    %cst_158 = arith.constant 0.000000e+00 : f32
    %294 = vector.broadcast %cst_158 : f32 to vector<32x32xf32>
    %295 = arith.maximumf %293, %294 : vector<32x32xf32>
    %c3_159 = arith.constant 3 : index
    %c0_160 = arith.constant 0 : index
    %c0_161 = arith.constant 0 : index
    %296 = vector.load %arg7[%c3_159, %c0_160, %c0_161] : memref<4x1x32xf32, #tpu.memory_space<vmem>>, vector<1x1x32xf32>
    %297 = vector.shape_cast %296 : vector<1x1x32xf32> to vector<1x32xf32>
    %c8_i32_162 = arith.constant 8 : i32
    %298 = tpu.dynamic_rotate %295 by %c8_i32_162 dim 0 : vector<32x32xf32>, i32 -> vector<32x32xf32>
    %cst_163 = arith.constant 0.000000e+00 : f32
    %299 = vector.broadcast %cst_163 : f32 to vector<32x32xf32>
    %300 = arith.select %10, %298, %299 : vector<32x32xi1>, vector<32x32xf32>
    %c4_i32_164 = arith.constant 4 : i32
    %301 = tpu.dynamic_rotate %295 by %c4_i32_164 dim 0 : vector<32x32xf32>, i32 -> vector<32x32xf32>
    %cst_165 = arith.constant 0.000000e+00 : f32
    %302 = vector.broadcast %cst_165 : f32 to vector<32x32xf32>
    %303 = arith.select %8, %301, %302 : vector<32x32xi1>, vector<32x32xf32>
    %304 = tpu.concatenate %300, %303, %295 in 1 : vector<32x32xf32>, vector<32x32xf32>, vector<32x32xf32> -> vector<32x96xf32>
    %c3_166 = arith.constant 3 : index
    %c0_167 = arith.constant 0 : index
    %c0_168 = arith.constant 0 : index
    %305 = vector.load %arg6[%c3_166, %c0_167, %c0_168] : memref<4x96x32xf32, #tpu.memory_space<vmem>>, vector<1x96x32xf32>
    %306 = vector.shape_cast %305 : vector<1x96x32xf32> to vector<96x32xf32>
    %cst_169 = arith.constant dense<0.000000e+00> : vector<32x32xf32>
    %307 = tpu.matmul %304, %306, %cst_169 {dimension_numbers = #tpu.dot_dimension_numbers<[1], [0], [0], [1], [0, 0, 1, 1], [], []>} : vector<32x96xf32>, vector<96x32xf32>, vector<32x32xf32> -> vector<32x32xf32>
    %308 = vector.broadcast %297 : vector<1x32xf32> to vector<32x32xf32>
    %309 = arith.addf %307, %308 : vector<32x32xf32>
    %c3_170 = arith.constant 3 : index
    %c0_171 = arith.constant 0 : index
    %c0_172 = arith.constant 0 : index
    %310 = vector.load %arg8[%c3_170, %c0_171, %c0_172] : memref<4x1x32xf32, #tpu.memory_space<vmem>>, vector<1x1x32xf32>
    %311 = vector.shape_cast %310 : vector<1x1x32xf32> to vector<1x32xf32>
    %c3_173 = arith.constant 3 : index
    %c0_174 = arith.constant 0 : index
    %c0_175 = arith.constant 0 : index
    %312 = vector.load %arg9[%c3_173, %c0_174, %c0_175] : memref<4x1x32xf32, #tpu.memory_space<vmem>>, vector<1x1x32xf32>
    %313 = vector.shape_cast %312 : vector<1x1x32xf32> to vector<1x32xf32>
    %cst_176 = arith.constant dense<0.000000e+00> : vector<32xf32>
    %314 = vector.multi_reduction <add>, %309, %cst_176 [1] : vector<32x32xf32> to vector<32xf32>
    %315 = vector.shape_cast %314 : vector<32xf32> to vector<32x1xf32>
    %cst_177 = arith.constant 3.125000e-02 : f32
    %316 = vector.broadcast %cst_177 : f32 to vector<32x1xf32>
    %317 = arith.mulf %315, %316 : vector<32x1xf32>
    %318 = vector.broadcast %317 : vector<32x1xf32> to vector<32x32xf32>
    %319 = arith.subf %309, %318 : vector<32x32xf32>
    %320 = arith.mulf %319, %319 : vector<32x32xf32>
    %cst_178 = arith.constant dense<0.000000e+00> : vector<32xf32>
    %321 = vector.multi_reduction <add>, %320, %cst_178 [1] : vector<32x32xf32> to vector<32xf32>
    %322 = vector.shape_cast %321 : vector<32xf32> to vector<32x1xf32>
    %cst_179 = arith.constant 3.125000e-02 : f32
    %323 = vector.broadcast %cst_179 : f32 to vector<32x1xf32>
    %324 = arith.mulf %322, %323 : vector<32x1xf32>
    %cst_180 = arith.constant 9.99999993E-9 : f32
    %325 = vector.broadcast %cst_180 : f32 to vector<32x1xf32>
    %326 = arith.addf %324, %325 : vector<32x1xf32>
    %327 = math.rsqrt %326 : vector<32x1xf32>
    %328 = vector.broadcast %327 : vector<32x1xf32> to vector<32x32xf32>
    %329 = arith.mulf %319, %328 : vector<32x32xf32>
    %330 = vector.broadcast %311 : vector<1x32xf32> to vector<32x32xf32>
    %331 = arith.mulf %329, %330 : vector<32x32xf32>
    %332 = vector.broadcast %313 : vector<1x32xf32> to vector<32x32xf32>
    %333 = arith.addf %331, %332 : vector<32x32xf32>
    %cst_181 = arith.constant 0.000000e+00 : f32
    %334 = vector.broadcast %cst_181 : f32 to vector<32x32xf32>
    %335 = arith.maximumf %333, %334 : vector<32x32xf32>
    %336 = arith.addf %335, %255 : vector<32x32xf32>
    %c0_182 = arith.constant 0 : index
    %c0_183 = arith.constant 0 : index
    %337 = vector.load %arg13[%c0_182, %c0_183] : memref<32x32xf32, #tpu.memory_space<vmem>>, vector<32x32xf32>
    tpu.vector_store %arg13[%c0_182, %c0_183], %336 {strides = array<i32>} : memref<32x32xf32, #tpu.memory_space<vmem>>, vector<32x32xf32>,
    %c15 = arith.constant 15 : index
    %c0_184 = arith.constant 0 : index
    %338 = tpu.strided_load %arg13[%c15, %c0_184] {strides = array<i32: 16, 1>} : memref<32x32xf32, #tpu.memory_space<vmem>>, vector<2x32xf32>
    %c0_185 = arith.constant 0 : index
    %c0_186 = arith.constant 0 : index
    %339 = vector.load %arg10[%c0_185, %c0_186] : memref<32x32xf32, #tpu.memory_space<vmem>>, vector<32x32xf32>
    %cst_187 = arith.constant dense<0.000000e+00> : vector<2x32xf32>
    %340 = tpu.matmul %338, %339, %cst_187 {dimension_numbers = #tpu.dot_dimension_numbers<[1], [0], [0], [1], [0, 0, 1, 1], [], []>} : vector<2x32xf32>, vector<32x32xf32>, vector<2x32xf32> -> vector<2x32xf32>
    %c0_188 = arith.constant 0 : index
    %c0_189 = arith.constant 0 : index
    %341 = vector.load %arg11[%c0_188, %c0_189] : memref<1x32xf32, #tpu.memory_space<vmem>>, vector<1x32xf32>
    %342 = vector.broadcast %341 : vector<1x32xf32> to vector<2x32xf32>
    %343 = arith.addf %340, %342 : vector<2x32xf32>
    %c0_190 = arith.constant 0 : index
    %c0_191 = arith.constant 0 : index
    %c0_192 = arith.constant 0 : index
    %344 = vector.load %arg12[%c0_190, %c0_191, %c0_192] : memref<1x2x32xf32, #tpu.memory_space<vmem>>, vector<1x2x32xf32>
    %345 = vector.shape_cast %344 : vector<1x2x32xf32> to vector<2x32xf32>
    %346 = vector.shape_cast %343 : vector<2x32xf32> to vector<1x2x32xf32>
    tpu.vector_store %arg12[%c0_190, %c0_191, %c0_192], %346 {strides = array<i32>} : memref<1x2x32xf32, #tpu.memory_space<vmem>>, vector<1x2x32xf32>,
    return
  }
  func.func @transform_0(%arg0: i32) -> (i32, i32, i32) {
    %c0_i32 = arith.constant 0 : i32
    %c0_i32_0 = arith.constant 0 : i32
    %c0_i32_1 = arith.constant 0 : i32
    return %arg0, %c0_i32, %c0_i32_0 : i32, i32, i32
  }
  func.func @transform_1(%arg0: i32) -> (i32, i32, i32) {
    %c0_i32 = arith.constant 0 : i32
    %c0_i32_0 = arith.constant 0 : i32
    %c0_i32_1 = arith.constant 0 : i32
    %c0_i32_2 = arith.constant 0 : i32
    return %c0_i32, %c0_i32_0, %c0_i32_1 : i32, i32, i32
  }
  func.func @transform_2(%arg0: i32) -> (i32, i32, i32) {
    %c0_i32 = arith.constant 0 : i32
    %c0_i32_0 = arith.constant 0 : i32
    %c0_i32_1 = arith.constant 0 : i32
    %c0_i32_2 = arith.constant 0 : i32
    return %c0_i32, %c0_i32_0, %c0_i32_1 : i32, i32, i32
  }
  func.func @transform_3(%arg0: i32) -> (i32, i32, i32) {
    %c0_i32 = arith.constant 0 : i32
    %c0_i32_0 = arith.constant 0 : i32
    %c0_i32_1 = arith.constant 0 : i32
    %c0_i32_2 = arith.constant 0 : i32
    return %c0_i32, %c0_i32_0, %c0_i32_1 : i32, i32, i32
  }
  func.func @transform_4(%arg0: i32) -> (i32, i32, i32) {
    %c0_i32 = arith.constant 0 : i32
    %c0_i32_0 = arith.constant 0 : i32
    %c0_i32_1 = arith.constant 0 : i32
    %c0_i32_2 = arith.constant 0 : i32
    return %c0_i32, %c0_i32_0, %c0_i32_1 : i32, i32, i32
  }
  func.func @transform_5(%arg0: i32) -> (i32, i32, i32) {
    %c0_i32 = arith.constant 0 : i32
    %c0_i32_0 = arith.constant 0 : i32
    %c0_i32_1 = arith.constant 0 : i32
    %c0_i32_2 = arith.constant 0 : i32
    return %c0_i32, %c0_i32_0, %c0_i32_1 : i32, i32, i32
  }
  func.func @transform_6(%arg0: i32) -> (i32, i32, i32) {
    %c0_i32 = arith.constant 0 : i32
    %c0_i32_0 = arith.constant 0 : i32
    %c0_i32_1 = arith.constant 0 : i32
    %c0_i32_2 = arith.constant 0 : i32
    return %c0_i32, %c0_i32_0, %c0_i32_1 : i32, i32, i32
  }
  func.func @transform_7(%arg0: i32) -> (i32, i32, i32) {
    %c0_i32 = arith.constant 0 : i32
    %c0_i32_0 = arith.constant 0 : i32
    %c0_i32_1 = arith.constant 0 : i32
    %c0_i32_2 = arith.constant 0 : i32
    return %c0_i32, %c0_i32_0, %c0_i32_1 : i32, i32, i32
  }
  func.func @transform_8(%arg0: i32) -> (i32, i32, i32) {
    %c0_i32 = arith.constant 0 : i32
    %c0_i32_0 = arith.constant 0 : i32
    %c0_i32_1 = arith.constant 0 : i32
    %c0_i32_2 = arith.constant 0 : i32
    return %c0_i32, %c0_i32_0, %c0_i32_1 : i32, i32, i32
  }
  func.func @transform_9(%arg0: i32) -> (i32, i32) {
    %c0_i32 = arith.constant 0 : i32
    %c0_i32_0 = arith.constant 0 : i32
    %c0_i32_1 = arith.constant 0 : i32
    return %c0_i32, %c0_i32_0 : i32, i32
  }
  func.func @transform_10(%arg0: i32) -> (i32, i32) {
    %c0_i32 = arith.constant 0 : i32
    %c0_i32_0 = arith.constant 0 : i32
    %c0_i32_1 = arith.constant 0 : i32
    return %c0_i32, %c0_i32_0 : i32, i32
  }
  func.func @transform_11(%arg0: i32) -> (i32, i32, i32) {
    %c0_i32 = arith.constant 0 : i32
    %c0_i32_0 = arith.constant 0 : i32
    %c0_i32_1 = arith.constant 0 : i32
    return %arg0, %c0_i32, %c0_i32_0 : i32, i32, i32
  }
}

</mosaic_0001>

<bundles_post_ra>
// kernel: tpu_custom_call.1
= control target key start
LH: loop header
LB: loop body
LE: loop exit
PB: predicated region body
PF: predicated region fallthrough
CT: control target
= control target key end

     0   :  { %s4699_s0 = inlined_call_operand.vmem [shape: f32[2,32,32], index: 0, kind: input, shape index: {}]   ;;  %s4700_s1 = inlined_call_operand.vmem [shape: f32[4,96,32], index: 1, kind: input, shape index: {}]   ;;  %s4701_s2 = inlined_call_operand.vmem [shape: f32[4,1,32], index: 2, kind: input, shape index: {}]   ;;  %s4702_s3 = inlined_call_operand.vmem [shape: f32[4,1,32], index: 3, kind: input, shape index: {}]   ;;  %s4703_s4 = inlined_call_operand.vmem [shape: f32[4,1,32], index: 4, kind: input, shape index: {}]   ;;  %s4704_s5 = inlined_call_operand.vmem [shape: f32[4,96,32], index: 5, kind: input, shape index: {}]   ;;  %s4705_s6 = inlined_call_operand.vmem [shape: f32[4,1,32], index: 6, kind: input, shape index: {}]   ;;  %s4706_s7 = inlined_call_operand.vmem [shape: f32[4,1,32], index: 7, kind: input, shape index: {}]   ;;  %s4707_s8 = inlined_call_operand.vmem [shape: f32[4,1,32], index: 8, kind: input, shape index: {}]   ;;  %s4708_s9 = inlined_call_operand.vmem [shape: f32[32,32], index: 9, kind: input, shape index: {}]   ;;  %s4709_s10 = inlined_call_operand.vmem [shape: f32[1,32], index: 10, kind: input, shape index: {}]   ;;  %s4710_s11 = inlined_call_operand.hbm [shape: f32[2,2,32], index: 11, kind: output, shape index: {}]  }
   0x1   :  { %4715 = sst [smem:[#allocation7_spill]] %s4699_s0 }
   0x2   :  { %16 = vsyncpa [#allocation4], 0 }
   0x3   :  { %18 = vsyncpa [#allocation4 + $0x1], 0  ;;  %s3653_s17 = smov 0   ;;  %s3655_s18 = smov 0  }
   0x4   :  { %s3657_s19 = smov 0   ;;  %s3659_s20 = smov 0  }
   0x5 LB: > { %s3674_s21 = sadd.s32 4294967295, %s3585_s20   ;;  %s2673_s22 = sadd.s32 4294967294, %s3585_s20   ;;  %s3585_s20 = sphi %s3659_s20, %s4726_s20   ;;  %s3581_s19 = sphi %s3657_s19, %s4725_s19   ;;  %s3577_s18 = sphi %s3655_s18, %s4724_s18   ;;  %s3573_s17 = sphi %s3653_s17, %s4723_s17  }
   0x6   : > { %s3678_s23 = sadd.s32 1, %s3585_s20   ;;  %s267_s24 = sadd.s32 1, %s3581_s19 }
   0x7   : > { %s264_s25 = ssub.s32 %s3585_s20, %s3678_s23  ;;  %p277_p0 = scmp.ne.s32.totalorder %s3581_s19, %s3577_s18 }
   0x8   : > { %p265_p1 = scmp.eq.s32.totalorder %s264_s25, 0  ;;  %p278_p2 = scmp.eq.s32.totalorder %s3674_s21, 1 }
   0x9   : > { %p283_p3 = scmp.ne.s32.totalorder %s3577_s18, %s3573_s17  ;;  %p284_p4 = scmp.eq.s32.totalorder %s2673_s22, 1 }
   0xa   : > { %s3689_s26 = scalar_select %p265_p1, %s3581_s19, %s267_s24  }
   0xb   : > { %p3691_p5 = por %p278_p2, %p277_p0  ;;  %p3695_p6 = por %p284_p4, %p283_p3 }
   0xc   : > { %4716 = sst [smem:[#allocation6_spill]] %s3689_s26  ;;  %p2676_p7 = scmp.ge.s32.totalorder %s3585_s20, 1 }
   0xd   : > { %p340_p8 = scmp.lt.s32.totalorder %s3585_s20, 3 }
   0xf   : > { %p341_p9 = pnand %p2676_p7, %p340_p8 }
  0x10   : > { %p380_p10 = scmp.lt.s32.totalorder (!%p341_p9), %s3674_s21, 1  ;;  %v385_v0 = vlaneseq (!%p341_p9)  ;;  %v483_v1 = vld [vmem:[%s4700_s1] sm:$0xff] (!%p341_p9)  ;;  %v484_v2 = vld [vmem:[%s4700_s1 + $0x8] sm:$0xff] (!%p341_p9)  ;;  %v485_v3 = vld [vmem:[%s4700_s1 + $0x10] sm:$0xff] (!%p341_p9)  ;;  %s4719_s0 = sld [smem:[#allocation7_spill]] (!%p341_p9)  ;;  %vm473_vm5 = vcmask (!%p341_p9), 261120  }
  0x11   : > { %344 = sbr.rel (%p341_p9) target bundleno = 5553 (0x15b1), region = 64  ;;  %v3217_v4 = vpack.c.bf16 (!%p341_p9), %v484_v2, %v483_v1  ;;  %v486_v5 = vld [vmem:[%s4700_s1 + $0x18] sm:$0xff] (!%p341_p9)  ;;  %v487_v8 = vld [vmem:[%s4700_s1 + $0x20] sm:$0xff] (!%p341_p9)  ;;  %v488_v9 = vld [vmem:[%s4700_s1 + $0x28] sm:$0xff] (!%p341_p9)  ;;  %s4711_s12 = smov (!%p341_p9), 32   ;;  %vm478_vm6 = vcmask (!%p341_p9), 523264  }
  0x12   : > { %v3715_v6 = vshrl.u32 (!%p341_p9), %v385_v0, 7  ;;  %v3221_v7 = vpack.c.bf16 (!%p341_p9), %v486_v5, %v485_v3  ;;  %v3225_v12 = vpack.c.bf16 (!%p341_p9), %v488_v9, %v487_v8  ;;  %v489_v13 = vld [vmem:[%s4700_s1 + $0x30] sm:$0xff] (!%p341_p9)  ;;  %v490_v14 = vld [vmem:[%s4700_s1 + $0x38] sm:$0xff] (!%p341_p9)  ;;  %v491_v27 = vld [vmem:[%s4700_s1 + $0x40] sm:$0xff] (!%p341_p9)  ;;  %vm501_vm8 = vcmask (!%p341_p9), 785408   ;;  %s4721_s14 = smov (!%p341_p9), 32  }
  0x13   : > { %3218 = vmatprep.subr.bf16.mxu0 (!%p341_p9), %v3217_v4  ;;  %v3229_v26 = vpack.c.bf16 (!%p341_p9), %v490_v14, %v489_v13  ;;  %v492_v28 = vld [vmem:[%s4700_s1 + $0x48] sm:$0xff] (!%p341_p9)  ;;  %v493_v33 = vld [vmem:[%s4700_s1 + $0x50] sm:$0xff] (!%p341_p9)  ;;  %v494_v34 = vld [vmem:[%s4700_s1 + $0x58] sm:$0xff] (!%p341_p9)  ;;  %vm3590_vm12 = vmmov (!%p341_p9), 0   ;;  %s377_s15 = sand.u32 (!%p341_p9), 1, %s3577_s18   ;;  %s2829_s29 = sshll.u32 (!%p341_p9), %s3674_s21, 5 }
  0x14   : > { %v3724_v10 = vand.u32 (!%p341_p9), 15, %v3715_v6  ;;  %3220 = vmatpush3.bf16.msra.mxu0 (!%p341_p9), %v3217_v4  ;;  %v388_v11 = vadd.s32 (!%p341_p9), 16, %v3715_v6  ;;  %vm432_vm0 = vcmp.lt.s32.totalorder (!%p341_p9), %v3715_v6, 1  ;;  %v3233_v32 = vpack.c.bf16 (!%p341_p9), %v492_v28, %v491_v27  ;;  %v2680_v63 = vld [vmem:[%s4701_s2] ss:$0 sm:$0xff] (!%p341_p9)  ;;  %s4657_s26 = scalar_lea.hbm (!%p341_p9), %s4710_s11, %s2829_s29 }
  0x15   : > { %3222 = vmatprep.subr.bf16.mxu0 (!%p341_p9), %v3221_v7  ;;  %v3237_v36 = vpack.c.bf16 (!%p341_p9), %v494_v34, %v493_v33  ;;  %vm419_vm3 = vcmp.lt.s32.totalorder (!%p341_p9), %v3715_v6, 2  ;;  %vm682_vm9 = vcmp.lt.s32.totalorder (!%p341_p9), %v3715_v6, 4  ;;  %vm2598_vm13 = vcmask (!%p341_p9), 254976  }
  0x16   : > { %vm394_vm1 = vcmp.ge.s32.totalorder (!%p341_p9), %v3724_v10, 1  ;;  %v3752_v23 = vand.u32 (!%p341_p9), 15, %v388_v11  ;;  %vm398_vm4 = vcmp.ge.s32.totalorder (!%p341_p9), %v3724_v10, 2  ;;  %vm402_vm10 = vcmp.ge.s32.totalorder (!%p341_p9), %v3724_v10, 4 }
  0x18   : > { %s381_s24 = scalar_select %p380_p10, %s3674_s21, 1  ;;  %3224 = vmatpush3.bf16.msra.mxu0 %v3221_v7  ;;  %vm396_vm2 = vcmp.ge.s32.totalorder %v3752_v23, 1  ;;  %vm400_vm7 = vcmp.ge.s32.totalorder %v3752_v23, 2  ;;  %vm404_vm11 = vcmp.ge.s32.totalorder %v3752_v23, 4 }
  0x19   : > { %3226 = vmatprep.subr.bf16.mxu0 %v3225_v12  ;;  %s3592_s21 = smov [#allocation3]  }
  0x1a   : > { %s2832_s13 = sshll.u32 %s381_s24, 5  ;;  %s4713_s24 = smov 64  }
  0x1b   : > { %s384_s16 = scalar_lea.vmem %s4719_s0, %s2832_s13  ;;  %s4720_s13 = smov 64  }
  0x1c   : > { %v3736_v15 = vld [vmem:[%s384_s16] sm:$0xff]  ;;  %v3738_v16 = vld [vmem:[%s384_s16 + $0x8] sm:$0xff]  ;;  %v3741_v17 = vld [vmem:[%s384_s16 + $0x18] sm:$0xff]  ;;  %3228 = vmatpush3.bf16.msra.mxu0 %v3225_v12 }
  0x1d   : > { %461 = vrot.lane.b32.xlu1 %v3736_v15, %s4713_s24  ;;  %v428_v18 = vrot.slane %v3736_v15, 7  ;;  %v429_v19 = vrot.slane %v3738_v16, 7  ;;  %v431_v20 = vrot.slane %v3741_v17, 7  ;;  %v3748_v21 = vld [vmem:[%s384_s16 + $0x10] sm:$0xff]  ;;  %3230 = vmatprep.subr.bf16.mxu0 %v3229_v26  ;;  %v418_v37 = vrot.slane %v3741_v17, 6  ;;  %s2677_s16 = sshll.u32 %s377_s15, 1 }
  0x1e   : > { %v430_v22 = vrot.slane %v3748_v21, 7  ;;  %v415_v38 = vrot.slane %v3736_v15, 6  ;;  %v416_v40 = vrot.slane %v3738_v16, 6  ;;  %v417_v43 = vrot.slane %v3748_v21, 6  ;;  %s379_s30 = scalar_lea.vmem [#allocation3], %s2677_s16  ;;  %s3527_s16 = sshll.u32 %s3592_s21, 4  ;;  %s3528_s16 = int_to_ptr.vmem [resolvable:$false] %s3527_s16 }
  0x1f   : > { %v435_v24 = vsel %vm432_vm0, %v428_v18, %v429_v19  ;;  %v436_v25 = vsel %vm432_vm0, %v431_v20, %v428_v18  ;;  %s3529_s22 = scalar_lea.vmem %s3528_s16, 64 }
  0x20   : > { %447 = vrot.lane.b32.xlu0 %v435_v24, %s4711_s12  ;;  %v437_v29 = vsel %vm394_vm1, %v436_v25, 0.0  ;;  %v433_v30 = vsel %vm432_vm0, %v430_v22, %v431_v20  ;;  %v434_v31 = vsel %vm432_vm0, %v429_v19, %v430_v22  ;;  %3232 = vmatpush3.bf16.msra.mxu0 %v3229_v26  ;;  %v423_v41 = vsel %vm419_vm3, %v418_v37, %v415_v38 }
  0x21   : > { %463 = vrot.lane.b32.xlu1 %v3738_v16, %s4713_s24  ;;  %v439_v35 = vsel %vm396_vm2, %v434_v31, 0.0  ;;  %3234 = vmatprep.subr.bf16.mxu0 %v3233_v32  ;;  %v422_v44 = vsel %vm419_vm3, %v415_v38, %v416_v40  ;;  %v424_v46 = vsel %vm398_vm4, %v423_v41, 0.0  ;;  %v421_v49 = vsel %vm419_vm3, %v416_v40, %v417_v43  ;;  %v744_v40 = vld [vmem:[%s4704_s5 + $0x8] sm:$0xff]  ;;  %v745_v41 = vld [vmem:[%s4704_s5 + $0x10] sm:$0xff] }
  0x22   : > { %v420_v53 = vsel %vm419_vm3, %v417_v43, %v418_v37  ;;  %v426_v55 = vsel %vm400_vm7, %v421_v49, 0.0  ;;  %v746_v43 = vld [vmem:[%s4704_s5 + $0x18] sm:$0xff] }
  0x23   : > { %v750_v49 = vld [vmem:[%s4704_s5 + $0x38] sm:$0xff] }
  0x24   : > { %445 = vrot.lane.b32.xlu0 %v437_v29, %s4711_s12  ;;  %3236 = vmatpush3.bf16.msra.mxu0 %v3233_v32 }
  0x25   : > { %451 = vrot.lane.b32.xlu1 %v433_v30, %s4711_s12  ;;  %3238 = vmatprep.subr.bf16.mxu0 %v3237_v36 }
  0x28   : > { %449 = vrot.lane.b32.xlu0 %v439_v35, %s4711_s12  ;;  %3240 = vmatpush3.bf16.msra.mxu0 %v3237_v36 }
  0x29   : > { %467 = vrot.lane.b32.xlu1 %v3741_v17, %s4713_s24 }
  0x2c   : > { %465 = vrot.lane.b32.xlu0 %v3748_v21, %s4713_s24  ;;  %s2614_s24 = sshll.u32 %s379_s30, 4  ;;  %s4659_s24 = int_to_ptr.vmem [resolvable:$true] %s2614_s24 }
  0x2d   : > { %p3530_p0 = scmp.lt.s32.totalorder %s4659_s24, %s3528_s16 }
  0x8f   : > { %v462_v39 = vpop.permute.xlu1 %461 }
  0x92   : > { %v448_v42 = vpop.permute.xlu0 %447 }
  0x93   : > { %v464_v45 = vpop.permute.xlu1 %463  ;;  %v475_v47 = vsel %vm473_vm5, %v422_v44, %v448_v42  ;;  %v3245_v44 = vpack.c.bf16 %v746_v43, %v745_v41 }
  0x94   : > { %v480_v54 = vsel %vm478_vm6, %v475_v47, %v464_v45  ;;  %v747_v45 = vld [vmem:[%s4704_s5 + $0x20] sm:$0xff] }
  0x96   : > { %v446_v48 = vpop.permute.xlu0 %445 }
  0x97   : > { %v474_v50 = vsel %vm473_vm5, %v424_v46, %v446_v48  ;;  %v452_v51 = vpop.permute.xlu1 %451  ;;  %v748_v46 = vld [vmem:[%s4704_s5 + $0x28] sm:$0xff]  ;;  %v749_v48 = vld [vmem:[%s4704_s5 + $0x30] sm:$0xff] }
  0x98   : > { %v479_v52 = vsel %vm478_vm6, %v474_v50, %v462_v39  ;;  %v477_v57 = vsel %vm473_vm5, %v420_v53, %v452_v51  ;;  %v743_v39 = vld [vmem:[%s4704_s5] sm:$0xff]  ;;  %v3249_v47 = vpack.c.bf16 %v748_v46, %v747_v45  ;;  %v3253_v50 = vpack.c.bf16 %v750_v49, %v749_v48 }
  0x99   : > { %2990 = vmatprep.mubr.msk.f32.mxu0 %vm501_vm8, %v479_v52  ;;  %v3241_v42 = vpack.c.bf16 %v744_v40, %v743_v39 }
  0x9a   : > { %v450_v56 = vpop.permute.xlu0 %449  ;;  %2991 = vmatmul.mubr.msk.f32.vlgmr.msra.gmra.mrb[0].mxu0 %vm501_vm8, %v480_v54 }
  0x9b   : > { %v468_v58 = vpop.permute.xlu1 %467  ;;  %v476_v59 = vsel %vm473_vm5, %v426_v55, %v450_v56  ;;  %3242 = vmatprep.subr.bf16.mxu1 %v3241_v42 }
  0x9c   : > { %v482_v60 = vsel %vm478_vm6, %v477_v57, %v468_v58  ;;  %3244 = vmatpush3.bf16.msra.mxu1 %v3241_v42 }
  0x9d   : > { %3246 = vmatprep.subr.bf16.mxu1 %v3245_v44 }
  0x9e   : > { %v466_v61 = vpop.permute.xlu0 %465 }
  0x9f   : > { %v481_v62 = vsel %vm478_vm6, %v476_v59, %v466_v61 }
  0xa0   : > { %2993 = vmatprep.mubr.msk.f32.mxu0 %vm501_vm8, %v481_v62  ;;  %3248 = vmatpush3.bf16.msra.mxu1 %v3245_v44 }
  0xa1   : > { %2994 = vmatmul.mubr.msk.f32.gmra.mrb[2].mxu0 %vm501_vm8, %v482_v60  ;;  %3250 = vmatprep.subr.bf16.mxu1 %v3249_v47 }
  0xa4   : > { %3252 = vmatpush3.bf16.msra.mxu1 %v3249_v47 }
  0xa5   : > { %3254 = vmatprep.subr.bf16.mxu1 %v3253_v50 }
  0xa8   : > { %3256 = vmatpush3.bf16.msra.mxu1 %v3253_v50 }
 0x16d   : > { %v2992_v0 = vpop.f32.mrb[0].mxu0 }
 0x16e   : > { %v580_v1 = vpop.f32.mrb[1].mxu0  ;;  %v586_v3 = vadd.f32 %v2992_v0, %v2680_v63  ;;  %v2685_v0 = vld [vmem:[%s4702_s3] ss:$0 sm:$0xff] }
 0x16f   : > { %v581_v2 = vadd.f32 %v2680_v63, %v580_v1  ;;  %v751_v1 = vld [vmem:[%s4704_s5 + $0x40] sm:$0xff] }
 0x170   : > { %v604_v9 = vsel %vm473_vm5, %v586_v3, 0.0 }
 0x171   : > { %v601_v4 = vsel %vm473_vm5, %v581_v2, 0.0 }
 0x172   : > { %602 = vadd.xlane.f32.xlu0 %v601_v4 }
 0x174   : > { %v2995_v5 = vpop.f32.mrb[2].mxu0 }
 0x175   : > { %v596_v7 = vadd.f32 %v2995_v5, %v2680_v63  ;;  %v590_v8 = vpop.f32.mrb[3].mxu0  ;;  %v2686_v5 = vld [vmem:[%s4703_s4] ss:$0 sm:$0xff] }
 0x176   : > { %v591_v11 = vadd.f32 %v2680_v63, %v590_v8  ;;  %605 = vadd.xlane.f32.xlu0 %v604_v9  ;;  %v753_v8 = vld [vmem:[%s4704_s5 + $0x50] sm:$0xff]  ;;  %v754_v9 = vld [vmem:[%s4704_s5 + $0x58] sm:$0xff] }
 0x177   : > { %v610_v12 = vsel %vm473_vm5, %v596_v7, 0.0 }
 0x178   : > { %611 = vadd.xlane.f32.xlu1 %v610_v12  ;;  %v607_v13 = vsel %vm473_vm5, %v591_v11, 0.0  ;;  %v3261_v12 = vpack.c.bf16 %v754_v9, %v753_v8 }
 0x17a   : > { %608 = vadd.xlane.f32.xlu0 %v607_v13 }
 0x1ff   : > { %v603_v14 = vpop.xlane.xlu0 %602 }
 0x200   : > { %v613_v18 = vmul.f32 0.03125, %v603_v14 }
 0x202   : > { %v617_v19 = vsub.f32 %v581_v2, %v613_v18  ;;  %v752_v2 = vld [vmem:[%s4704_s5 + $0x48] sm:$0xff] }
 0x203   : > { %v606_v20 = vpop.xlane.xlu0 %605  ;;  %v3257_v4 = vpack.c.bf16 %v752_v2, %v751_v1 }
 0x204   : > { %v614_v22 = vmul.f32 0.03125, %v606_v20  ;;  %v621_v24 = vmul.f32 %v617_v19, %v617_v19 }
 0x205   : > { %v612_v25 = vpop.xlane.xlu1 %611  ;;  %3258 = vmatprep.subr.bf16.mxu1 %v3257_v4 }
 0x206   : > { %v3827_v26 = vsub.f32 %v586_v3, %v614_v22  ;;  %v616_v27 = vmul.f32 0.03125, %v612_v25  ;;  %v625_v28 = vsel %vm473_vm5, %v621_v24, 0.0  ;;  %3260 = vmatpush3.bf16.msra.mxu1 %v3257_v4 }
 0x207   : > { %626 = vadd.xlane.f32.xlu1 %v625_v28  ;;  %v609_v29 = vpop.xlane.xlu0 %608  ;;  %3262 = vmatprep.subr.bf16.mxu1 %v3261_v12 }
 0x208   : > { %v3830_v30 = vsub.f32 %v596_v7, %v616_v27  ;;  %v615_v31 = vmul.f32 0.03125, %v609_v29  ;;  %v622_v32 = vmul.f32 %v3827_v26, %v3827_v26 }
 0x20a   : > { %v3834_v33 = vsub.f32 %v591_v11, %v615_v31  ;;  %v628_v34 = vsel %vm473_vm5, %v622_v32, 0.0  ;;  %v624_v35 = vmul.f32 %v3830_v30, %v3830_v30  ;;  %3264 = vmatpush3.bf16.msra.mxu1 %v3261_v12 }
 0x20b   : > { %629 = vadd.xlane.f32.xlu1 %v628_v34 }
 0x20c   : > { %v634_v36 = vsel %vm473_vm5, %v624_v35, 0.0  ;;  %v623_v37 = vmul.f32 %v3834_v33, %v3834_v33 }
 0x20d   : > { %635 = vadd.xlane.f32.xlu0 %v634_v36 }
 0x20e   : > { %v631_v38 = vsel %vm473_vm5, %v623_v37, 0.0 }
 0x211   : > { %632 = vadd.xlane.f32.xlu0 %v631_v38 }
 0x294   : > { %v627_v51 = vpop.xlane.xlu1 %626 }
 0x295   : > { %v637_v52 = vmul.f32 0.03125, %v627_v51 }
 0x297   : > { %v641_v53 = vadd.f32 1e-08, %v637_v52 }
 0x298   : > { %v630_v54 = vpop.xlane.xlu1 %629 }
 0x299   : > { %3459 = vrsqrt.f32 %v641_v53  ;;  %v638_v55 = vmul.f32 0.03125, %v630_v54 }
 0x29a   : > { %v636_v56 = vpop.xlane.xlu0 %635 }
 0x29b   : > { %v642_v57 = vadd.f32 1e-08, %v638_v55  ;;  %v640_v58 = vmul.f32 0.03125, %v636_v56 }
 0x29d   : > { %3461 = vrsqrt.f32 %v642_v57  ;;  %v644_v59 = vadd.f32 1e-08, %v640_v58 }
 0x29e   : > { %v633_v60 = vpop.xlane.xlu0 %632 }
 0x29f   : > { %3463 = vrsqrt.f32 %v644_v59  ;;  %v639_v61 = vmul.f32 0.03125, %v633_v60 }
 0x2a1   : > { %v643_v62 = vadd.f32 1e-08, %v639_v61 }
 0x2a3   : > { %v3460_v63 = vpop.eup %3459  ;;  %3465 = vrsqrt.f32 %v643_v62 }
 0x2a4   : > { %v649_v3 = vmul.f32 %v3460_v63, %v617_v19 }
 0x2a6   : > { %v659_v7 = vmul.f32 %v2685_v0, %v649_v3 }
 0x2a7   : > { %v3462_v11 = vpop.eup %3461 }
 0x2a8   : > { %v650_v13 = vmul.f32 %v3462_v11, %v3827_v26  ;;  %v669_v14 = vadd.f32 %v2686_v5, %v659_v7  ;;  %v2687_v7 = vld [vmem:[%s4705_s6] ss:$0 sm:$0xff] }
 0x2a9   : > { %v3464_v18 = vpop.eup %3463 }
 0x2aa   : > { %v652_v19 = vmul.f32 %v3464_v18, %v3830_v30  ;;  %v660_v20 = vmul.f32 %v2685_v0, %v650_v13  ;;  %v673_v22 = vmax.f32 %v669_v14, 0.0 }
 0x2ac   : > { %v670_v24 = vadd.f32 %v2686_v5, %v660_v20  ;;  %v662_v25 = vmul.f32 %v2685_v0, %v652_v19  ;;  %v691_v32 = vrot.slane %v673_v22, 6  ;;  %v678_v34 = vrot.slane %v673_v22, 4 }
 0x2ad   : > { %v3466_v27 = vpop.eup %3465 }
 0x2ae   : > { %v651_v28 = vmul.f32 %v3466_v27, %v3834_v33  ;;  %v674_v29 = vmax.f32 %v670_v24, 0.0  ;;  %v672_v31 = vadd.f32 %v2686_v5, %v662_v25 }
 0x2b0   : > { %725 = vrot.lane.b32.xlu1 %v674_v29, %s4720_s13  ;;  %v692_v26 = vrot.slane %v674_v29, 6  ;;  %v676_v35 = vmax.f32 %v672_v31, 0.0  ;;  %v661_v36 = vmul.f32 %v2685_v0, %v651_v28  ;;  %v679_v30 = vrot.slane %v674_v29, 4 }
 0x2b2   : > { %v697_v37 = vsel %vm419_vm3, %v691_v32, %v692_v26  ;;  %v694_v38 = vrot.slane %v676_v35, 6  ;;  %v671_v39 = vadd.f32 %v2686_v5, %v661_v36  ;;  %v685_v33 = vsel %vm682_vm9, %v678_v34, %v679_v30 }
 0x2b3   : > { %709 = vrot.lane.b32.xlu0 %v697_v37, %s4721_s14  ;;  %v681_v40 = vrot.slane %v676_v35, 4 }
 0x2b4   : > { %723 = vrot.lane.b32.xlu1 %v673_v22, %s4720_s13  ;;  %v698_v41 = vsel %vm419_vm3, %v694_v38, %v691_v32  ;;  %v675_v42 = vmax.f32 %v671_v39, 0.0 }
 0x2b5   : > { %v686_v43 = vsel %vm682_vm9, %v681_v40, %v678_v34  ;;  %v699_v46 = vsel %vm398_vm4, %v698_v41, 0.0 }
 0x2b6   : > { %v693_v44 = vrot.slane %v675_v42, 6  ;;  %v680_v45 = vrot.slane %v675_v42, 4  ;;  %v687_v57 = vsel %vm402_vm10, %v686_v43, 0.0 }
 0x2b8   : > { %707 = vrot.lane.b32.xlu1 %v699_v46, %s4721_s14  ;;  %v696_v47 = vsel %vm419_vm3, %v692_v26, %v693_v44  ;;  %v684_v48 = vsel %vm682_vm9, %v679_v30, %v680_v45  ;;  %v683_v49 = vsel %vm682_vm9, %v680_v45, %v681_v40  ;;  %v695_v51 = vsel %vm419_vm3, %v693_v44, %v694_v38  ;;  %v2695_v46 = vld [vmem:[%s4700_s1 + $0x60] sm:$0xff] }
 0x2b9   : > { %v701_v50 = vsel %vm400_vm7, %v696_v47, 0.0  ;;  %v689_v63 = vsel %vm404_vm11, %v684_v48, 0.0  ;;  %v2696_v47 = vld [vmem:[%s4700_s1 + $0x68] sm:$0xff]  ;;  %v2697_v48 = vld [vmem:[%s4700_s1 + $0x70] sm:$0xff] }
 0x2ba   : > { %711 = vrot.lane.b32.xlu0 %v701_v50, %s4721_s14  ;;  %v2698_v50 = vld [vmem:[%s4700_s1 + $0x78] sm:$0xff] }
 0x2bc   : > { %713 = vrot.lane.b32.xlu1 %v695_v51, %s4721_s14  ;;  %v3269_v51 = vpack.c.bf16 %v2698_v50, %v2697_v48 }
 0x2be   : > { %727 = vrot.lane.b32.xlu0 %v675_v42, %s4720_s13 }
 0x2c0   : > { %729 = vrot.lane.b32.xlu1 %v676_v35, %s4720_s13 }
 0x322   : > { %v726_v52 = vpop.permute.xlu1 %725 }
 0x325   : > { %v710_v54 = vpop.permute.xlu0 %709 }
 0x326   : > { %v724_v53 = vpop.permute.xlu1 %723  ;;  %v736_v55 = vsel %vm473_vm5, %v685_v33, %v710_v54 }
 0x327   : > { %v740_v61 = vsel %vm478_vm6, %v736_v55, %v726_v52  ;;  %v2699_v52 = vld [vmem:[%s4700_s1 + $0x80] sm:$0xff]  ;;  %v2701_v55 = vld [vmem:[%s4700_s1 + $0x90] sm:$0xff] }
 0x32a   : > { %v708_v56 = vpop.permute.xlu1 %707 }
 0x32b   : > { %v735_v58 = vsel %vm473_vm5, %v687_v57, %v708_v56  ;;  %v2702_v56 = vld [vmem:[%s4700_s1 + $0x98] sm:$0xff] }
 0x32c   : > { %v712_v59 = vpop.permute.xlu0 %711  ;;  %v739_v60 = vsel %vm478_vm6, %v735_v58, %v724_v53  ;;  %v2700_v53 = vld [vmem:[%s4700_s1 + $0x88] sm:$0xff]  ;;  %v3277_v57 = vpack.c.bf16 %v2702_v56, %v2701_v55 }
 0x32d   : > { %3020 = vmatprep.mubr.msk.f32.mxu1 %vm501_vm8, %v739_v60  ;;  %v737_v0 = vsel %vm473_vm5, %v689_v63, %v712_v59  ;;  %v3273_v54 = vpack.c.bf16 %v2700_v53, %v2699_v52 }
 0x32e   : > { %v714_v62 = vpop.permute.xlu1 %713  ;;  %3021 = vmatmul.mubr.msk.f32.vlgmr.msra.gmra.mrb[0].mxu1 %vm501_vm8, %v740_v61 }
 0x32f   : > { %v738_v3 = vsel %vm473_vm5, %v683_v49, %v714_v62  ;;  %v3265_v49 = vpack.c.bf16 %v2696_v47, %v2695_v46 }
 0x330   : > { %v728_v1 = vpop.permute.xlu0 %727 }
 0x331   : > { %v741_v2 = vsel %vm478_vm6, %v737_v0, %v728_v1  ;;  %3266 = vmatprep.subr.bf16.mxu0 %v3265_v49 }
 0x332   : > { %v730_v4 = vpop.permute.xlu1 %729  ;;  %3023 = vmatprep.mubr.msk.f32.mxu1 %vm501_vm8, %v741_v2  ;;  %3268 = vmatpush3.bf16.msra.mxu0 %v3265_v49 }
 0x333   : > { %v742_v5 = vsel %vm478_vm6, %v738_v3, %v730_v4  ;;  %3270 = vmatprep.subr.bf16.mxu0 %v3269_v51 }
 0x334   : > { %3024 = vmatmul.mubr.msk.f32.gmra.mrb[2].mxu1 %vm501_vm8, %v742_v5 }
 0x336   : > { %3272 = vmatpush3.bf16.msra.mxu0 %v3269_v51 }
 0x337   : > { %3274 = vmatprep.subr.bf16.mxu0 %v3273_v54 }
 0x33a   : > { %3276 = vmatpush3.bf16.msra.mxu0 %v3273_v54 }
 0x33b   : > { %3278 = vmatprep.subr.bf16.mxu0 %v3277_v57 }
 0x33e   : > { %3280 = vmatpush3.bf16.msra.mxu0 %v3277_v57 }
 0x401   : > { %v3022_v8 = vpop.f32.mrb[0].mxu1 }
 0x402   : > { %v839_v9 = vpop.f32.mrb[1].mxu1  ;;  %v845_v12 = vadd.f32 %v3022_v8, %v2687_v7  ;;  %v2692_v8 = vld [vmem:[%s4706_s7] ss:$0 sm:$0xff] }
 0x403   : > { %v840_v11 = vadd.f32 %v2687_v7, %v839_v9 }
 0x404   : > { %v863_v22 = vsel %vm473_vm5, %v845_v12, 0.0 }
 0x405   : > { %v860_v13 = vsel %vm473_vm5, %v840_v11, 0.0 }
 0x406   : > { %861 = vadd.xlane.f32.xlu0 %v860_v13  ;;  %v2703_v13 = vld [vmem:[%s4700_s1 + $0xa0] sm:$0xff] }
 0x407   : > { %v3025_v14 = vpop.f32.mrb[2].mxu1 }
 0x408   : > { %v855_v18 = vadd.f32 %v3025_v14, %v2687_v7  ;;  %v849_v19 = vpop.f32.mrb[3].mxu1  ;;  %v2704_v14 = vld [vmem:[%s4700_s1 + $0xa8] sm:$0xff] }
 0x409   : > { %v850_v20 = vadd.f32 %v2687_v7, %v849_v19  ;;  %v3281_v19 = vpack.c.bf16 %v2704_v14, %v2703_v13 }
 0x40a   : > { %864 = vadd.xlane.f32.xlu0 %v863_v22  ;;  %v869_v24 = vsel %vm473_vm5, %v855_v18, 0.0 }
 0x40b   : > { %870 = vadd.xlane.f32.xlu1 %v869_v24  ;;  %v866_v25 = vsel %vm473_vm5, %v850_v20, 0.0  ;;  %3282 = vmatprep.subr.bf16.mxu0 %v3281_v19 }
 0x40c   : > { %3284 = vmatpush3.bf16.msra.mxu0 %v3281_v19 }
 0x40e   : > { %867 = vadd.xlane.f32.xlu0 %v866_v25 }
 0x493   : > { %v862_v27 = vpop.xlane.xlu0 %861 }
 0x494   : > { %v872_v28 = vmul.f32 0.03125, %v862_v27  ;;  %v2705_v27 = vld [vmem:[%s4700_s1 + $0xb0] sm:$0xff] }
 0x496   : > { %v876_v29 = vsub.f32 %v840_v11, %v872_v28  ;;  %v2693_v11 = vld [vmem:[%s4707_s8] ss:$0 sm:$0xff]  ;;  %v2706_v28 = vld [vmem:[%s4700_s1 + $0xb8] sm:$0xff] }
 0x497   : > { %v865_v31 = vpop.xlane.xlu0 %864 }
 0x498   : > { %v873_v32 = vmul.f32 0.03125, %v865_v31  ;;  %v871_v34 = vpop.xlane.xlu1 %870  ;;  %v880_v26 = vmul.f32 %v876_v29, %v876_v29 }
 0x499   : > { %v875_v35 = vmul.f32 0.03125, %v871_v34 }
 0x49a   : > { %v877_v36 = vsub.f32 %v845_v12, %v873_v32  ;;  %v884_v30 = vsel %vm473_vm5, %v880_v26, 0.0  ;;  %v3285_v32 = vpack.c.bf16 %v2706_v28, %v2705_v27 }
 0x49b   : > { %v879_v37 = vsub.f32 %v855_v18, %v875_v35  ;;  %885 = vadd.xlane.f32.xlu1 %v884_v30  ;;  %v868_v38 = vpop.xlane.xlu0 %867 }
 0x49c   : > { %v874_v39 = vmul.f32 0.03125, %v868_v38  ;;  %v881_v33 = vmul.f32 %v877_v36, %v877_v36  ;;  %3286 = vmatprep.subr.bf16.mxu0 %v3285_v32 }
 0x49d   : > { %v883_v40 = vmul.f32 %v879_v37, %v879_v37  ;;  %3288 = vmatpush3.bf16.msra.mxu0 %v3285_v32 }
 0x49e   : > { %v3943_v41 = vsub.f32 %v850_v20, %v874_v39  ;;  %v887_v42 = vsel %vm473_vm5, %v881_v33, 0.0 }
 0x49f   : > { %888 = vadd.xlane.f32.xlu1 %v887_v42  ;;  %v893_v43 = vsel %vm473_vm5, %v883_v40, 0.0 }
 0x4a0   : > { %894 = vadd.xlane.f32.xlu0 %v893_v43  ;;  %v882_v44 = vmul.f32 %v3943_v41, %v3943_v41 }
 0x4a2   : > { %v890_v45 = vsel %vm473_vm5, %v882_v44, 0.0 }
 0x4a4   : > { %891 = vadd.xlane.f32.xlu0 %v890_v45 }
 0x528   : > { %v886_v58 = vpop.xlane.xlu1 %885 }
 0x529   : > { %v896_v59 = vmul.f32 0.03125, %v886_v58 }
 0x52b   : > { %v900_v60 = vadd.f32 1e-08, %v896_v59 }
 0x52c   : > { %v889_v61 = vpop.xlane.xlu1 %888 }
 0x52d   : > { %3467 = vrsqrt.f32 %v900_v60  ;;  %v897_v62 = vmul.f32 0.03125, %v889_v61  ;;  %v895_v63 = vpop.xlane.xlu0 %894 }
 0x52e   : > { %v899_v0 = vmul.f32 0.03125, %v895_v63 }
 0x52f   : > { %v901_v1 = vadd.f32 1e-08, %v897_v62 }
 0x530   : > { %v903_v2 = vadd.f32 1e-08, %v899_v0 }
 0x531   : > { %3469 = vrsqrt.f32 %v901_v1  ;;  %v892_v3 = vpop.xlane.xlu0 %891 }
 0x532   : > { %3471 = vrsqrt.f32 %v903_v2  ;;  %v898_v4 = vmul.f32 0.03125, %v892_v3 }
 0x534   : > { %v902_v5 = vadd.f32 1e-08, %v898_v4 }
 0x536   : > { %3473 = vrsqrt.f32 %v902_v5 }
 0x537   : > { %v3468_v7 = vpop.eup %3467 }
 0x538   : > { %v908_v9 = vmul.f32 %v3468_v7, %v876_v29 }
 0x53a   : > { %v918_v12 = vmul.f32 %v2692_v8, %v908_v9 }
 0x53b   : > { %v3470_v18 = vpop.eup %3469 }
 0x53c   : > { %v3472_v20 = vpop.eup %3471  ;;  %v909_v22 = vmul.f32 %v3470_v18, %v877_v36  ;;  %v928_v24 = vadd.f32 %v2693_v11, %v918_v12  ;;  %v2707_v18 = vld [vmem:[%s4701_s2 + $0x1] ss:$0 sm:$0xff] }
 0x53d   : > { %v911_v25 = vmul.f32 %v3472_v20, %v879_v37 }
 0x53e   : > { %v919_v29 = vmul.f32 %v2692_v8, %v909_v22  ;;  %v932_v31 = vmax.f32 %v928_v24, 0.0 }
 0x53f   : > { %v921_v34 = vmul.f32 %v2692_v8, %v911_v25 }
 0x540   : > { %v3474_v26 = vpop.eup %3473  ;;  %v929_v35 = vadd.f32 %v2693_v11, %v919_v29  ;;  %v3994_v38 = vadd.f32 %v932_v31, %v3736_v15 }
 0x541   : > { %v910_v36 = vmul.f32 %v3474_v26, %v3943_v41  ;;  %v931_v30 = vadd.f32 %v2693_v11, %v921_v34 }
 0x542   : > { %v933_v37 = vmax.f32 %v929_v35, 0.0  ;;  %v954_v41 = vrot.slane %v3994_v38, 6  ;;  %v942_v53 = vrot.slane %v3994_v38, 4 }
 0x543   : > { %v920_v39 = vmul.f32 %v2692_v8, %v910_v36  ;;  %v935_v33 = vmax.f32 %v931_v30, 0.0 }
 0x544   : > { %v3997_v40 = vadd.f32 %v933_v37, %v3738_v16 }
 0x545   : > { %v4000_v42 = vadd.f32 %v935_v33, %v3741_v17  ;;  %v930_v43 = vadd.f32 %v2693_v11, %v920_v39 }
 0x546   : > { %988 = vrot.lane.b32.xlu1 %v3997_v40, %s4720_s13  ;;  %v955_v44 = vrot.slane %v3997_v40, 6  ;;  %v943_v54 = vrot.slane %v3997_v40, 4 }
 0x547   : > { %v957_v15 = vrot.slane %v4000_v42, 6  ;;  %v934_v45 = vmax.f32 %v930_v43, 0.0  ;;  %v945_v52 = vrot.slane %v4000_v42, 4 }
 0x548   : > { %v960_v46 = vsel %vm419_vm3, %v954_v41, %v955_v44  ;;  %v948_v59 = vsel %vm682_vm9, %v942_v53, %v943_v54 }
 0x549   : > { %972 = vrot.lane.b32.xlu0 %v960_v46, %s4721_s14  ;;  %v4011_v16 = vadd.f32 %v934_v45, %v3748_v21  ;;  %v961_v17 = vsel %vm419_vm3, %v957_v15, %v954_v41  ;;  %v949_v57 = vsel %vm682_vm9, %v945_v52, %v942_v53  ;;  %v2717_v53 = vld [vmem:[%s4704_s5 + $0x60] sm:$0xff] }
 0x54a   : > { %986 = vrot.lane.b32.xlu1 %v3994_v38, %s4720_s13  ;;  %v962_v48 = vsel %vm398_vm4, %v961_v17, 0.0  ;;  %v950_v62 = vsel %vm402_vm10, %v949_v57, 0.0  ;;  %v2720_v57 = vld [vmem:[%s4704_s5 + $0x78] sm:$0xff] }
 0x54b   : > { %v956_v47 = vrot.slane %v4011_v16, 6  ;;  %v944_v58 = vrot.slane %v4011_v16, 4 }
 0x54d   : > { %v959_v49 = vsel %vm419_vm3, %v955_v44, %v956_v47  ;;  %v958_v50 = vsel %vm419_vm3, %v956_v47, %v957_v15  ;;  %v947_v0 = vsel %vm682_vm9, %v943_v54, %v944_v58  ;;  %v946_v11 = vsel %vm682_vm9, %v944_v58, %v945_v52  ;;  %v2718_v54 = vld [vmem:[%s4704_s5 + $0x68] sm:$0xff] }
 0x54e   : > { %970 = vrot.lane.b32.xlu1 %v962_v48, %s4721_s14  ;;  %v964_v21 = vsel %vm400_vm7, %v959_v49, 0.0  ;;  %v952_v4 = vsel %vm404_vm11, %v947_v0, 0.0 }
 0x54f   : > { %974 = vrot.lane.b32.xlu0 %v964_v21, %s4721_s14 }
 0x552   : > { %976 = vrot.lane.b32.xlu1 %v958_v50, %s4721_s14 }
 0x553   : > { %990 = vrot.lane.b32.xlu0 %v4011_v16, %s4720_s13 }
 0x556   : > { %992 = vrot.lane.b32.xlu1 %v4000_v42, %s4720_s13 }
 0x5b8   : > { %v989_v51 = vpop.permute.xlu1 %988 }
 0x5bb   : > { %v973_v56 = vpop.permute.xlu0 %972 }
 0x5bc   : > { %v987_v55 = vpop.permute.xlu1 %986  ;;  %v999_v60 = vsel %vm473_vm5, %v948_v59, %v973_v56  ;;  %v3289_v56 = vpack.c.bf16 %v2718_v54, %v2717_v53  ;;  %v2721_v59 = vld [vmem:[%s4704_s5 + $0x80] sm:$0xff] }
 0x5bd   : > { %v1003_v3 = vsel %vm478_vm6, %v999_v60, %v989_v51  ;;  %v2722_v60 = vld [vmem:[%s4704_s5 + $0x88] sm:$0xff] }
 0x5be   : > { %3290 = vmatprep.subr.bf16.mxu1 %v3289_v56 }
 0x5bf   : > { %3292 = vmatpush3.bf16.msra.mxu1 %v3289_v56 }
 0x5c0   : > { %v971_v61 = vpop.permute.xlu1 %970 }
 0x5c1   : > { %v998_v63 = vsel %vm473_vm5, %v950_v62, %v971_v61  ;;  %v975_v1 = vpop.permute.xlu0 %974  ;;  %v3297_v61 = vpack.c.bf16 %v2722_v60, %v2721_v59  ;;  %v2723_v62 = vld [vmem:[%s4704_s5 + $0x90] sm:$0xff] }
 0x5c2   : > { %v1002_v2 = vsel %vm478_vm6, %v998_v63, %v987_v55  ;;  %v1000_v7 = vsel %vm473_vm5, %v952_v4, %v975_v1  ;;  %v2719_v55 = vld [vmem:[%s4704_s5 + $0x70] sm:$0xff]  ;;  %v2724_v63 = vld [vmem:[%s4704_s5 + $0x98] sm:$0xff] }
 0x5c3   : > { %3050 = vmatprep.mubr.msk.f32.mxu0 %vm501_vm8, %v1002_v2  ;;  %v3293_v58 = vpack.c.bf16 %v2720_v57, %v2719_v55  ;;  %v3301_v0 = vpack.c.bf16 %v2724_v63, %v2723_v62 }
 0x5c4   : > { %v977_v5 = vpop.permute.xlu1 %976  ;;  %3051 = vmatmul.mubr.msk.f32.vlgmr.msra.gmra.mrb[4].mxu0 %vm501_vm8, %v1003_v3 }
 0x5c5   : > { %v991_v8 = vpop.permute.xlu0 %990  ;;  %v1001_v12 = vsel %vm473_vm5, %v946_v11, %v977_v5  ;;  %3294 = vmatprep.subr.bf16.mxu1 %v3293_v58 }
 0x5c6   : > { %v1004_v9 = vsel %vm478_vm6, %v1000_v7, %v991_v8  ;;  %3296 = vmatpush3.bf16.msra.mxu1 %v3293_v58 }
 0x5c7   : > { %3053 = vmatprep.mubr.msk.f32.mxu0 %vm501_vm8, %v1004_v9  ;;  %3298 = vmatprep.subr.bf16.mxu1 %v3297_v61 }
 0x5c8   : > { %v993_v13 = vpop.permute.xlu1 %992 }
 0x5c9   : > { %v1005_v14 = vsel %vm478_vm6, %v1001_v12, %v993_v13 }
 0x5ca   : > { %3054 = vmatmul.mubr.msk.f32.gmra.mrb[6].mxu0 %vm501_vm8, %v1005_v14  ;;  %3300 = vmatpush3.bf16.msra.mxu1 %v3297_v61 }
 0x5cb   : > { %3302 = vmatprep.subr.bf16.mxu1 %v3301_v0 }
 0x5ce   : > { %3304 = vmatpush3.bf16.msra.mxu1 %v3301_v0 }
 0x697   : > { %v3052_v19 = vpop.f32.mrb[4].mxu0 }
 0x698   : > { %v1103_v20 = vpop.f32.mrb[5].mxu0  ;;  %v1109_v24 = vadd.f32 %v3052_v19, %v2707_v18  ;;  %v2714_v19 = vld [vmem:[%s4702_s3 + $0x1] ss:$0 sm:$0xff] }
 0x699   : > { %v1104_v22 = vadd.f32 %v2707_v18, %v1103_v20 }
 0x69a   : > { %v1129_v32 = vsel %vm473_vm5, %v1109_v24, 0.0 }
 0x69b   : > { %v1126_v25 = vsel %vm473_vm5, %v1104_v22, 0.0 }
 0x69c   : > { %1127 = vadd.xlane.f32.xlu0 %v1126_v25  ;;  %v2715_v25 = vld [vmem:[%s4703_s4 + $0x1] ss:$0 sm:$0xff] }
 0x69d   : > { %v3055_v27 = vpop.f32.mrb[6].mxu0 }
 0x69e   : > { %v1119_v28 = vadd.f32 %v3055_v27, %v2707_v18  ;;  %v1113_v29 = vpop.f32.mrb[7].mxu0 }
 0x69f   : > { %v1114_v31 = vadd.f32 %v2707_v18, %v1113_v29 }
 0x6a0   : > { %1130 = vadd.xlane.f32.xlu0 %v1129_v32  ;;  %v1135_v34 = vsel %vm473_vm5, %v1119_v28, 0.0  ;;  %v2728_v32 = vld [vmem:[%s4704_s5 + $0xb8] sm:$0xff] }
 0x6a1   : > { %1136 = vadd.xlane.f32.xlu1 %v1135_v34  ;;  %v1132_v26 = vsel %vm473_vm5, %v1114_v31, 0.0 }
 0x6a4   : > { %1133 = vadd.xlane.f32.xlu0 %v1132_v26 }
 0x729   : > { %v1128_v35 = vpop.xlane.xlu0 %1127 }
 0x72a   : > { %v1138_v36 = vmul.f32 0.03125, %v1128_v35 }
 0x72c   : > { %v1142_v30 = vsub.f32 %v1104_v22, %v1138_v36  ;;  %v2725_v22 = vld [vmem:[%s4704_s5 + $0xa0] sm:$0xff] }
 0x72d   : > { %v1131_v37 = vpop.xlane.xlu0 %1130 }
 0x72e   : > { %v1139_v39 = vmul.f32 0.03125, %v1131_v37  ;;  %v1137_v33 = vpop.xlane.xlu1 %1136  ;;  %v1146_v43 = vmul.f32 %v1142_v30, %v1142_v30 }
 0x72f   : > { %v1141_v41 = vmul.f32 0.03125, %v1137_v33 }
 0x730   : > { %v4068_v44 = vsub.f32 %v1109_v24, %v1139_v39  ;;  %v1150_v15 = vsel %vm473_vm5, %v1146_v43, 0.0  ;;  %v2726_v24 = vld [vmem:[%s4704_s5 + $0xa8] sm:$0xff] }
 0x731   : > { %v4071_v45 = vsub.f32 %v1119_v28, %v1141_v41  ;;  %1151 = vadd.xlane.f32.xlu1 %v1150_v15  ;;  %v1134_v46 = vpop.xlane.xlu0 %1133  ;;  %v3305_v27 = vpack.c.bf16 %v2726_v24, %v2725_v22 }
 0x732   : > { %v1140_v17 = vmul.f32 0.03125, %v1134_v46  ;;  %v1147_v47 = vmul.f32 %v4068_v44, %v4068_v44 }
 0x733   : > { %v1149_v48 = vmul.f32 %v4071_v45, %v4071_v45  ;;  %3306 = vmatprep.subr.bf16.mxu1 %v3305_v27 }
 0x734   : > { %v4077_v49 = vsub.f32 %v1114_v31, %v1140_v17  ;;  %v1153_v21 = vsel %vm473_vm5, %v1147_v47, 0.0  ;;  %v2727_v31 = vld [vmem:[%s4704_s5 + $0xb0] sm:$0xff]  ;;  %3308 = vmatpush3.bf16.msra.mxu1 %v3305_v27 }
 0x735   : > { %1154 = vadd.xlane.f32.xlu1 %v1153_v21  ;;  %v1159_v50 = vsel %vm473_vm5, %v1149_v48, 0.0  ;;  %v3309_v36 = vpack.c.bf16 %v2728_v32, %v2727_v31 }
 0x736   : > { %1160 = vadd.xlane.f32.xlu0 %v1159_v50  ;;  %v1148_v51 = vmul.f32 %v4077_v49, %v4077_v49 }
 0x737   : > { %3310 = vmatprep.subr.bf16.mxu1 %v3309_v36 }
 0x738   : > { %v1156_v52 = vsel %vm473_vm5, %v1148_v51, 0.0  ;;  %3312 = vmatpush3.bf16.msra.mxu1 %v3309_v36 }
 0x73a   : > { %1157 = vadd.xlane.f32.xlu0 %v1156_v52 }
 0x7be   : > { %v1152_v1 = vpop.xlane.xlu1 %1151 }
 0x7bf   : > { %v1162_v2 = vmul.f32 0.03125, %v1152_v1 }
 0x7c1   : > { %v1166_v3 = vadd.f32 1e-08, %v1162_v2 }
 0x7c2   : > { %v1155_v4 = vpop.xlane.xlu1 %1154 }
 0x7c3   : > { %3475 = vrsqrt.f32 %v1166_v3  ;;  %v1163_v5 = vmul.f32 0.03125, %v1155_v4  ;;  %v1161_v7 = vpop.xlane.xlu0 %1160 }
 0x7c4   : > { %v1165_v8 = vmul.f32 0.03125, %v1161_v7 }
 0x7c5   : > { %v1167_v9 = vadd.f32 1e-08, %v1163_v5 }
 0x7c6   : > { %v1169_v11 = vadd.f32 1e-08, %v1165_v8 }
 0x7c7   : > { %3477 = vrsqrt.f32 %v1167_v9  ;;  %v1158_v12 = vpop.xlane.xlu0 %1157 }
 0x7c8   : > { %3479 = vrsqrt.f32 %v1169_v11  ;;  %v1164_v13 = vmul.f32 0.03125, %v1158_v12  ;;  %v2729_v12 = vld [vmem:[%s4705_s6 + $0x1] ss:$0 sm:$0xff] }
 0x7ca   : > { %v1168_v14 = vadd.f32 1e-08, %v1164_v13 }
 0x7cc   : > { %3481 = vrsqrt.f32 %v1168_v14 }
 0x7cd   : > { %v3476_v18 = vpop.eup %3475 }
 0x7ce   : > { %v1174_v20 = vmul.f32 %v3476_v18, %v1142_v30 }
 0x7d0   : > { %v1184_v28 = vmul.f32 %v2714_v19, %v1174_v20 }
 0x7d1   : > { %v3478_v29 = vpop.eup %3477 }
 0x7d2   : > { %v3480_v34 = vpop.eup %3479  ;;  %v1175_v26 = vmul.f32 %v3478_v29, %v4068_v44  ;;  %v1194_v35 = vadd.f32 %v2715_v25, %v1184_v28 }
 0x7d3   : > { %v1177_v30 = vmul.f32 %v3480_v34, %v4071_v45 }
 0x7d4   : > { %v1185_v37 = vmul.f32 %v2714_v19, %v1175_v26  ;;  %v1198_v41 = vmax.f32 %v1194_v35, 0.0 }
 0x7d5   : > { %v1187_v39 = vmul.f32 %v2714_v19, %v1177_v30 }
 0x7d6   : > { %v3482_v33 = vpop.eup %3481  ;;  %v1195_v43 = vadd.f32 %v2715_v25, %v1185_v37  ;;  %v1208_v21 = vrot.slane %v1198_v41, 4 }
 0x7d7   : > { %v1176_v15 = vmul.f32 %v3482_v33, %v4077_v49  ;;  %v1197_v46 = vadd.f32 %v2715_v25, %v1187_v39 }
 0x7d8   : > { %v1199_v17 = vmax.f32 %v1195_v43, 0.0 }
 0x7d9   : > { %v1201_v47 = vmax.f32 %v1197_v46, 0.0  ;;  %v1186_v48 = vmul.f32 %v2714_v19, %v1176_v15 }
 0x7da   : > { %1242 = vrot.lane.b32.xlu1 %v1199_v17, %s4720_s13  ;;  %v1209_v44 = vrot.slane %v1199_v17, 4 }
 0x7db   : > { %v1211_v50 = vrot.slane %v1201_v47, 4  ;;  %v1196_v51 = vadd.f32 %v2715_v25, %v1186_v48 }
 0x7dc   : > { %v1214_v45 = vsel %vm682_vm9, %v1208_v21, %v1209_v44 }
 0x7dd   : > { %1226 = vrot.lane.b32.xlu0 %v1214_v45, %s4721_s14  ;;  %v1200_v52 = vmax.f32 %v1196_v51, 0.0  ;;  %v1215_v49 = vsel %vm682_vm9, %v1211_v50, %v1208_v21  ;;  %v2739_v45 = vld [vmem:[%s4700_s1 + $0xc0] sm:$0xff] }
 0x7de   : > { %1240 = vrot.lane.b32.xlu1 %v1198_v41, %s4720_s13  ;;  %v1216_v54 = vsel %vm402_vm10, %v1215_v49, 0.0  ;;  %v2741_v49 = vld [vmem:[%s4700_s1 + $0xd0] sm:$0xff] }
 0x7df   : > { %v1210_v53 = vrot.slane %v1200_v52, 4 }
 0x7e1   : > { %v1213_v55 = vsel %vm682_vm9, %v1209_v44, %v1210_v53  ;;  %v1212_v57 = vsel %vm682_vm9, %v1210_v53, %v1211_v50 }
 0x7e2   : > { %1224 = vrot.lane.b32.xlu1 %v1216_v54, %s4721_s14  ;;  %v1218_v56 = vsel %vm404_vm11, %v1213_v55, 0.0  ;;  %v2742_v54 = vld [vmem:[%s4700_s1 + $0xd8] sm:$0xff] }
 0x7e3   : > { %1228 = vrot.lane.b32.xlu0 %v1218_v56, %s4721_s14  ;;  %v3317_v55 = vpack.c.bf16 %v2742_v54, %v2741_v49  ;;  %v2743_v56 = vld [vmem:[%s4700_s1 + $0xe0] sm:$0xff] }
 0x7e6   : > { %1230 = vrot.lane.b32.xlu1 %v1212_v57, %s4721_s14  ;;  %v2744_v57 = vld [vmem:[%s4700_s1 + $0xe8] sm:$0xff] }
 0x7e7   : > { %1244 = vrot.lane.b32.xlu0 %v1200_v52, %s4720_s13 }
 0x7ea   : > { %1246 = vrot.lane.b32.xlu1 %v1201_v47, %s4720_s13 }
 0x84c   : > { %v1243_v58 = vpop.permute.xlu1 %1242 }
 0x84f   : > { %v1227_v60 = vpop.permute.xlu0 %1226 }
 0x850   : > { %v1241_v59 = vpop.permute.xlu1 %1240  ;;  %v1253_v61 = vsel %vm473_vm5, %v1198_v41, %v1227_v60  ;;  %v2746_v60 = vld [vmem:[%s4700_s1 + $0xf8] sm:$0xff] }
 0x851   : > { %v1257_v2 = vsel %vm478_vm6, %v1253_v61, %v1243_v58  ;;  %v3321_v58 = vpack.c.bf16 %v2744_v57, %v2743_v56 }
 0x854   : > { %v1225_v62 = vpop.permute.xlu1 %1224 }
 0x855   : > { %v1252_v63 = vsel %vm473_vm5, 0.0, %v1225_v62  ;;  %v1229_v0 = vpop.permute.xlu0 %1228 }
 0x856   : > { %v1256_v1 = vsel %vm478_vm6, %v1252_v63, %v1241_v59  ;;  %v1254_v4 = vsel %vm473_vm5, 0.0, %v1229_v0  ;;  %v2745_v59 = vld [vmem:[%s4700_s1 + $0xf0] sm:$0xff] }
 0x857   : > { %3080 = vmatprep.mubr.msk.f32.mxu1 %vm501_vm8, %v1256_v1  ;;  %v3325_v61 = vpack.c.bf16 %v2746_v60, %v2745_v59 }
 0x858   : > { %v1231_v3 = vpop.permute.xlu1 %1230  ;;  %3081 = vmatmul.mubr.msk.f32.vlgmr.msra.gmra.mrb[4].mxu1 %vm501_vm8, %v1257_v2 }
 0x859   : > { %v1245_v5 = vpop.permute.xlu0 %1244  ;;  %v1255_v8 = vsel %vm473_vm5, %v1200_v52, %v1231_v3  ;;  %v2740_v52 = vld [vmem:[%s4700_s1 + $0xc8] sm:$0xff] }
 0x85a   : > { %v1258_v7 = vsel %vm478_vm6, %v1254_v4, %v1245_v5  ;;  %v3313_v53 = vpack.c.bf16 %v2740_v52, %v2739_v45 }
 0x85b   : > { %3083 = vmatprep.mubr.msk.f32.mxu1 %vm501_vm8, %v1258_v7 }
 0x85c   : > { %v1247_v9 = vpop.permute.xlu1 %1246  ;;  %3314 = vmatprep.subr.bf16.mxu0 %v3313_v53 }
 0x85d   : > { %v1259_v11 = vsel %vm478_vm6, %v1255_v8, %v1247_v9  ;;  %3316 = vmatpush3.bf16.msra.mxu0 %v3313_v53 }
 0x85e   : > { %3084 = vmatmul.mubr.msk.f32.gmra.mrb[6].mxu1 %vm501_vm8, %v1259_v11  ;;  %3318 = vmatprep.subr.bf16.mxu0 %v3317_v55 }
 0x861   : > { %3320 = vmatpush3.bf16.msra.mxu0 %v3317_v55 }
 0x862   : > { %3322 = vmatprep.subr.bf16.mxu0 %v3321_v58 }
 0x865   : > { %3324 = vmatpush3.bf16.msra.mxu0 %v3321_v58 }
 0x866   : > { %3326 = vmatprep.subr.bf16.mxu0 %v3325_v61 }
 0x869   : > { %3328 = vmatpush3.bf16.msra.mxu0 %v3325_v61 }
 0x92b   : > { %v3082_v13 = vpop.f32.mrb[4].mxu1 }
 0x92c   : > { %v1357_v14 = vpop.f32.mrb[5].mxu1  ;;  %v1363_v19 = vadd.f32 %v3082_v13, %v2729_v12  ;;  %v2736_v13 = vld [vmem:[%s4706_s7 + $0x1] ss:$0 sm:$0xff] }
 0x92d   : > { %v1358_v18 = vadd.f32 %v2729_v12, %v1357_v14 }
 0x92e   : > { %v1383_v28 = vsel %vm473_vm5, %v1363_v19, 0.0 }
 0x92f   : > { %v1380_v20 = vsel %vm473_vm5, %v1358_v18, 0.0 }
 0x930   : > { %1381 = vadd.xlane.f32.xlu0 %v1380_v20  ;;  %v2747_v20 = vld [vmem:[%s4700_s1 + $0x100] sm:$0xff] }
 0x931   : > { %v3085_v22 = vpop.f32.mrb[6].mxu1 }
 0x932   : > { %v1373_v24 = vadd.f32 %v3085_v22, %v2729_v12  ;;  %v1367_v25 = vpop.f32.mrb[7].mxu1  ;;  %v2748_v22 = vld [vmem:[%s4700_s1 + $0x108] sm:$0xff] }
 0x933   : > { %v1368_v27 = vadd.f32 %v2729_v12, %v1367_v25  ;;  %v3329_v25 = vpack.c.bf16 %v2748_v22, %v2747_v20 }
 0x934   : > { %1384 = vadd.xlane.f32.xlu0 %v1383_v28  ;;  %v1389_v29 = vsel %vm473_vm5, %v1373_v24, 0.0 }
 0x935   : > { %1390 = vadd.xlane.f32.xlu1 %v1389_v29  ;;  %v1386_v31 = vsel %vm473_vm5, %v1368_v27, 0.0  ;;  %3330 = vmatprep.subr.bf16.mxu0 %v3329_v25 }
 0x936   : > { %3332 = vmatpush3.bf16.msra.mxu0 %v3329_v25 }
 0x938   : > { %1387 = vadd.xlane.f32.xlu0 %v1386_v31 }
 0x9bd   : > { %v1382_v32 = vpop.xlane.xlu0 %1381 }
 0x9be   : > { %v1392_v34 = vmul.f32 0.03125, %v1382_v32  ;;  %v2749_v32 = vld [vmem:[%s4700_s1 + $0x110] sm:$0xff] }
 0x9c0   : > { %v1396_v26 = vsub.f32 %v1358_v18, %v1392_v34  ;;  %v2737_v18 = vld [vmem:[%s4707_s8 + $0x1] ss:$0 sm:$0xff]  ;;  %v2750_v34 = vld [vmem:[%s4700_s1 + $0x118] sm:$0xff] }
 0x9c1   : > { %v1385_v35 = vpop.xlane.xlu0 %1384 }
 0x9c2   : > { %v1393_v36 = vmul.f32 0.03125, %v1385_v35  ;;  %v1391_v30 = vpop.xlane.xlu1 %1390  ;;  %v1400_v37 = vmul.f32 %v1396_v26, %v1396_v26 }
 0x9c3   : > { %v1395_v39 = vmul.f32 0.03125, %v1391_v30 }
 0x9c4   : > { %v1397_v33 = vsub.f32 %v1363_v19, %v1393_v36  ;;  %v1404_v43 = vsel %vm473_vm5, %v1400_v37, 0.0  ;;  %v3333_v36 = vpack.c.bf16 %v2750_v34, %v2749_v32 }
 0x9c5   : > { %v1399_v41 = vsub.f32 %v1373_v24, %v1395_v39  ;;  %1405 = vadd.xlane.f32.xlu1 %v1404_v43  ;;  %v1388_v15 = vpop.xlane.xlu0 %1387 }
 0x9c6   : > { %v1394_v46 = vmul.f32 0.03125, %v1388_v15  ;;  %v1401_v17 = vmul.f32 %v1397_v33, %v1397_v33  ;;  %3334 = vmatprep.subr.bf16.mxu0 %v3333_v36 }
 0x9c7   : > { %v1403_v47 = vmul.f32 %v1399_v41, %v1399_v41  ;;  %3336 = vmatpush3.bf16.msra.mxu0 %v3333_v36 }
 0x9c8   : > { %v4169_v48 = vsub.f32 %v1368_v27, %v1394_v46  ;;  %v1407_v44 = vsel %vm473_vm5, %v1401_v17, 0.0 }
 0x9c9   : > { %1408 = vadd.xlane.f32.xlu1 %v1407_v44  ;;  %v1413_v21 = vsel %vm473_vm5, %v1403_v47, 0.0 }
 0x9ca   : > { %1414 = vadd.xlane.f32.xlu0 %v1413_v21  ;;  %v1402_v50 = vmul.f32 %v4169_v48, %v4169_v48 }
 0x9cc   : > { %v1410_v51 = vsel %vm473_vm5, %v1402_v50, 0.0 }
 0x9ce   : > { %1411 = vadd.xlane.f32.xlu0 %v1410_v51 }
 0xa52   : > { %v1406_v62 = vpop.xlane.xlu1 %1405 }
 0xa53   : > { %v1416_v63 = vmul.f32 0.03125, %v1406_v62 }
 0xa55   : > { %v1420_v0 = vadd.f32 1e-08, %v1416_v63 }
 0xa56   : > { %v1409_v1 = vpop.xlane.xlu1 %1408 }
 0xa57   : > { %3483 = vrsqrt.f32 %v1420_v0  ;;  %v1417_v2 = vmul.f32 0.03125, %v1409_v1  ;;  %v1415_v3 = vpop.xlane.xlu0 %1414 }
 0xa58   : > { %v1419_v4 = vmul.f32 0.03125, %v1415_v3 }
 0xa59   : > { %v1421_v5 = vadd.f32 1e-08, %v1417_v2 }
 0xa5a   : > { %v1423_v7 = vadd.f32 1e-08, %v1419_v4 }
 0xa5b   : > { %3485 = vrsqrt.f32 %v1421_v5  ;;  %v1412_v8 = vpop.xlane.xlu0 %1411 }
 0xa5c   : > { %3487 = vrsqrt.f32 %v1423_v7  ;;  %v1418_v9 = vmul.f32 0.03125, %v1412_v8 }
 0xa5e   : > { %v1422_v11 = vadd.f32 1e-08, %v1418_v9 }
 0xa60   : > { %3489 = vrsqrt.f32 %v1422_v11 }
 0xa61   : > { %v3484_v12 = vpop.eup %3483 }
 0xa62   : > { %v1428_v14 = vmul.f32 %v3484_v12, %v1396_v26 }
 0xa64   : > { %v1438_v19 = vmul.f32 %v2736_v13, %v1428_v14 }
 0xa65   : > { %v3486_v24 = vpop.eup %3485 }
 0xa66   : > { %v3488_v27 = vpop.eup %3487  ;;  %v1429_v28 = vmul.f32 %v3486_v24, %v1397_v33  ;;  %v1448_v29 = vadd.f32 %v2737_v18, %v1438_v19  ;;  %v2751_v24 = vld [vmem:[%s4701_s2 + $0x2] ss:$0 sm:$0xff] }
 0xa67   : > { %v1431_v31 = vmul.f32 %v3488_v27, %v1399_v41 }
 0xa68   : > { %v1439_v26 = vmul.f32 %v2736_v13, %v1429_v28  ;;  %v1452_v35 = vmax.f32 %v1448_v29, 0.0 }
 0xa69   : > { %v1441_v30 = vmul.f32 %v2736_v13, %v1431_v31 }
 0xa6a   : > { %v3490_v37 = vpop.eup %3489  ;;  %v1449_v39 = vadd.f32 %v2737_v18, %v1439_v26  ;;  %v4220_v15 = vadd.f32 %v1452_v35, %v3994_v38 }
 0xa6b   : > { %v1430_v33 = vmul.f32 %v3490_v37, %v4169_v48  ;;  %v1451_v43 = vadd.f32 %v2737_v18, %v1441_v30 }
 0xa6c   : > { %v1453_v41 = vmax.f32 %v1449_v39, 0.0  ;;  %v1474_v48 = vrot.slane %v4220_v15, 7  ;;  %v1462_v57 = vrot.slane %v4220_v15, 6 }
 0xa6d   : > { %v1440_v46 = vmul.f32 %v2736_v13, %v1430_v33  ;;  %v1455_v17 = vmax.f32 %v1451_v43, 0.0 }
 0xa6e   : > { %v4223_v47 = vadd.f32 %v1453_v41, %v3997_v40 }
 0xa6f   : > { %v4226_v44 = vadd.f32 %v1455_v17, %v4000_v42  ;;  %v1450_v21 = vadd.f32 %v2737_v18, %v1440_v46 }
 0xa70   : > { %1508 = vrot.lane.b32.xlu1 %v4223_v47, %s4720_s13  ;;  %v1475_v50 = vrot.slane %v4223_v47, 7  ;;  %v1463_v58 = vrot.slane %v4223_v47, 6 }
 0xa71   : > { %v1477_v38 = vrot.slane %v4226_v44, 7  ;;  %v1454_v51 = vmax.f32 %v1450_v21, 0.0  ;;  %v1465_v56 = vrot.slane %v4226_v44, 6 }
 0xa72   : > { %v1480_v45 = vsel %vm432_vm0, %v1474_v48, %v1475_v50  ;;  %v1468_v63 = vsel %vm419_vm3, %v1462_v57, %v1463_v58 }
 0xa73   : > { %1492 = vrot.lane.b32.xlu0 %v1480_v45, %s4721_s14  ;;  %v4237_v40 = vadd.f32 %v1454_v51, %v4011_v16  ;;  %v1481_v42 = vsel %vm432_vm0, %v1477_v38, %v1474_v48  ;;  %v1469_v61 = vsel %vm419_vm3, %v1465_v56, %v1462_v57  ;;  %v2761_v57 = vld [vmem:[%s4704_s5 + $0xc0] sm:$0xff] }
 0xa74   : > { %1506 = vrot.lane.b32.xlu1 %v4220_v15, %s4720_s13  ;;  %v1482_v49 = vsel %vm394_vm1, %v1481_v42, 0.0  ;;  %v1470_v2 = vsel %vm398_vm4, %v1469_v61, 0.0  ;;  %v2764_v61 = vld [vmem:[%s4704_s5 + $0xd8] sm:$0xff] }
 0xa75   : > { %v1476_v52 = vrot.slane %v4237_v40, 7  ;;  %v1464_v62 = vrot.slane %v4237_v40, 6 }
 0xa77   : > { %v1479_v53 = vsel %vm432_vm0, %v1475_v50, %v1476_v52  ;;  %v1478_v54 = vsel %vm432_vm0, %v1476_v52, %v1477_v38  ;;  %v1467_v4 = vsel %vm419_vm3, %v1463_v58, %v1464_v62  ;;  %v1466_v18 = vsel %vm419_vm3, %v1464_v62, %v1465_v56  ;;  %v2762_v58 = vld [vmem:[%s4704_s5 + $0xc8] sm:$0xff] }
 0xa78   : > { %1490 = vrot.lane.b32.xlu1 %v1482_v49, %s4721_s14  ;;  %v1484_v16 = vsel %vm396_vm2, %v1479_v53, 0.0  ;;  %v1472_v9 = vsel %vm400_vm7, %v1467_v4, 0.0 }
 0xa79   : > { %1494 = vrot.lane.b32.xlu0 %v1484_v16, %s4721_s14 }
 0xa7c   : > { %1496 = vrot.lane.b32.xlu1 %v1478_v54, %s4721_s14 }
 0xa7d   : > { %1510 = vrot.lane.b32.xlu0 %v4237_v40, %s4720_s13 }
 0xa80   : > { %1512 = vrot.lane.b32.xlu1 %v4226_v44, %s4720_s13 }
 0xae2   : > { %v1509_v55 = vpop.permute.xlu1 %1508 }
 0xae5   : > { %v1493_v60 = vpop.permute.xlu0 %1492 }
 0xae6   : > { %v1507_v59 = vpop.permute.xlu1 %1506  ;;  %v1519_v0 = vsel %vm473_vm5, %v1468_v63, %v1493_v60  ;;  %v3337_v60 = vpack.c.bf16 %v2762_v58, %v2761_v57  ;;  %v2765_v63 = vld [vmem:[%s4704_s5 + $0xe0] sm:$0xff] }
 0xae7   : > { %v1523_v8 = vsel %vm478_vm6, %v1519_v0, %v1509_v55  ;;  %v2766_v0 = vld [vmem:[%s4704_s5 + $0xe8] sm:$0xff] }
 0xae8   : > { %3338 = vmatprep.subr.bf16.mxu1 %v3337_v60 }
 0xae9   : > { %3340 = vmatpush3.bf16.msra.mxu1 %v3337_v60 }
 0xaea   : > { %v1491_v1 = vpop.permute.xlu1 %1490 }
 0xaeb   : > { %v1518_v3 = vsel %vm473_vm5, %v1470_v2, %v1491_v1  ;;  %v1495_v5 = vpop.permute.xlu0 %1494  ;;  %v3345_v1 = vpack.c.bf16 %v2766_v0, %v2765_v63  ;;  %v2767_v2 = vld [vmem:[%s4704_s5 + $0xf0] sm:$0xff] }
 0xaec   : > { %v1522_v7 = vsel %vm478_vm6, %v1518_v3, %v1507_v59  ;;  %v1520_v12 = vsel %vm473_vm5, %v1472_v9, %v1495_v5  ;;  %v2763_v59 = vld [vmem:[%s4704_s5 + $0xd0] sm:$0xff]  ;;  %v2768_v3 = vld [vmem:[%s4704_s5 + $0xf8] sm:$0xff] }
 0xaed   : > { %3110 = vmatprep.mubr.msk.f32.mxu0 %vm501_vm8, %v1522_v7  ;;  %v3341_v62 = vpack.c.bf16 %v2764_v61, %v2763_v59  ;;  %v3349_v4 = vpack.c.bf16 %v2768_v3, %v2767_v2 }
 0xaee   : > { %v1497_v11 = vpop.permute.xlu1 %1496  ;;  %3111 = vmatmul.mubr.msk.f32.vlgmr.msra.gmra.mrb[8].mxu0 %vm501_vm8, %v1523_v8 }
 0xaef   : > { %v1511_v13 = vpop.permute.xlu0 %1510  ;;  %v1521_v19 = vsel %vm473_vm5, %v1466_v18, %v1497_v11  ;;  %3342 = vmatprep.subr.bf16.mxu1 %v3341_v62 }
 0xaf0   : > { %v1524_v14 = vsel %vm478_vm6, %v1520_v12, %v1511_v13  ;;  %3344 = vmatpush3.bf16.msra.mxu1 %v3341_v62 }
 0xaf1   : > { %3113 = vmatprep.mubr.msk.f32.mxu0 %vm501_vm8, %v1524_v14  ;;  %3346 = vmatprep.subr.bf16.mxu1 %v3345_v1 }
 0xaf2   : > { %v1513_v20 = vpop.permute.xlu1 %1512 }
 0xaf3   : > { %v1525_v22 = vsel %vm478_vm6, %v1521_v19, %v1513_v20 }
 0xaf4   : > { %3114 = vmatmul.mubr.msk.f32.gmra.mrb[10].mxu0 %vm501_vm8, %v1525_v22  ;;  %3348 = vmatpush3.bf16.msra.mxu1 %v3345_v1 }
 0xaf5   : > { %3350 = vmatprep.subr.bf16.mxu1 %v3349_v4 }
 0xaf8   : > { %3352 = vmatpush3.bf16.msra.mxu1 %v3349_v4 }
 0xbc1   : > { %v3112_v25 = vpop.f32.mrb[8].mxu0 }
 0xbc2   : > { %v1623_v27 = vpop.f32.mrb[9].mxu0  ;;  %v1629_v29 = vadd.f32 %v3112_v25, %v2751_v24  ;;  %v2758_v25 = vld [vmem:[%s4702_s3 + $0x2] ss:$0 sm:$0xff] }
 0xbc3   : > { %v1624_v28 = vadd.f32 %v2751_v24, %v1623_v27 }
 0xbc4   : > { %v1649_v36 = vsel %vm473_vm5, %v1629_v29, 0.0 }
 0xbc5   : > { %v1646_v31 = vsel %vm473_vm5, %v1624_v28, 0.0 }
 0xbc6   : > { %1647 = vadd.xlane.f32.xlu0 %v1646_v31  ;;  %v2759_v31 = vld [vmem:[%s4703_s4 + $0x2] ss:$0 sm:$0xff] }
 0xbc7   : > { %v3115_v32 = vpop.f32.mrb[10].mxu0 }
 0xbc8   : > { %v1639_v34 = vadd.f32 %v3115_v32, %v2751_v24  ;;  %v1633_v26 = vpop.f32.mrb[11].mxu0 }
 0xbc9   : > { %v1634_v35 = vadd.f32 %v2751_v24, %v1633_v26 }
 0xbca   : > { %1650 = vadd.xlane.f32.xlu0 %v1649_v36  ;;  %v1655_v30 = vsel %vm473_vm5, %v1639_v34, 0.0  ;;  %v2772_v36 = vld [vmem:[%s4704_s5 + $0x118] sm:$0xff] }
 0xbcb   : > { %1656 = vadd.xlane.f32.xlu1 %v1655_v30  ;;  %v1652_v37 = vsel %vm473_vm5, %v1634_v35, 0.0 }
 0xbce   : > { %1653 = vadd.xlane.f32.xlu0 %v1652_v37 }
 0xc53   : > { %v1648_v39 = vpop.xlane.xlu0 %1647 }
 0xc54   : > { %v1658_v33 = vmul.f32 0.03125, %v1648_v39 }
 0xc56   : > { %v1662_v43 = vsub.f32 %v1624_v28, %v1658_v33  ;;  %v2769_v28 = vld [vmem:[%s4704_s5 + $0x100] sm:$0xff] }
 0xc57   : > { %v1651_v41 = vpop.xlane.xlu0 %1650 }
 0xc58   : > { %v1659_v46 = vmul.f32 0.03125, %v1651_v41  ;;  %v1657_v17 = vpop.xlane.xlu1 %1656  ;;  %v1666_v21 = vmul.f32 %v1662_v43, %v1662_v43 }
 0xc59   : > { %v1661_v48 = vmul.f32 0.03125, %v1657_v17 }
 0xc5a   : > { %v4294_v50 = vsub.f32 %v1629_v29, %v1659_v46  ;;  %v1670_v38 = vsel %vm473_vm5, %v1666_v21, 0.0  ;;  %v2770_v29 = vld [vmem:[%s4704_s5 + $0x108] sm:$0xff] }
 0xc5b   : > { %v4297_v51 = vsub.f32 %v1639_v34, %v1661_v48  ;;  %1671 = vadd.xlane.f32.xlu1 %v1670_v38  ;;  %v1654_v45 = vpop.xlane.xlu0 %1653  ;;  %v3353_v32 = vpack.c.bf16 %v2770_v29, %v2769_v28 }
 0xc5c   : > { %v1660_v42 = vmul.f32 0.03125, %v1654_v45  ;;  %v1667_v52 = vmul.f32 %v4294_v50, %v4294_v50 }
 0xc5d   : > { %v1669_v49 = vmul.f32 %v4297_v51, %v4297_v51  ;;  %3354 = vmatprep.subr.bf16.mxu1 %v3353_v32 }
 0xc5e   : > { %v4303_v53 = vsub.f32 %v1634_v35, %v1660_v42  ;;  %v1673_v16 = vsel %vm473_vm5, %v1667_v52, 0.0  ;;  %v2771_v35 = vld [vmem:[%s4704_s5 + $0x110] sm:$0xff]  ;;  %3356 = vmatpush3.bf16.msra.mxu1 %v3353_v32 }
 0xc5f   : > { %1674 = vadd.xlane.f32.xlu1 %v1673_v16  ;;  %v1679_v54 = vsel %vm473_vm5, %v1669_v49, 0.0  ;;  %v3357_v33 = vpack.c.bf16 %v2772_v36, %v2771_v35 }
 0xc60   : > { %1680 = vadd.xlane.f32.xlu0 %v1679_v54  ;;  %v1668_v55 = vmul.f32 %v4303_v53, %v4303_v53 }
 0xc61   : > { %3358 = vmatprep.subr.bf16.mxu1 %v3357_v33 }
 0xc62   : > { %v1676_v56 = vsel %vm473_vm5, %v1668_v55, 0.0  ;;  %3360 = vmatpush3.bf16.msra.mxu1 %v3357_v33 }
 0xc64   : > { %1677 = vadd.xlane.f32.xlu0 %v1676_v56 }
 0xce8   : > { %v1672_v5 = vpop.xlane.xlu1 %1671 }
 0xce9   : > { %v1682_v7 = vmul.f32 0.03125, %v1672_v5 }
 0xceb   : > { %v1686_v8 = vadd.f32 1e-08, %v1682_v7 }
 0xcec   : > { %v1675_v9 = vpop.xlane.xlu1 %1674 }
 0xced   : > { %3491 = vrsqrt.f32 %v1686_v8  ;;  %v1683_v11 = vmul.f32 0.03125, %v1675_v9  ;;  %v1681_v12 = vpop.xlane.xlu0 %1680 }
 0xcee   : > { %v1685_v13 = vmul.f32 0.03125, %v1681_v12 }
 0xcef   : > { %v1687_v14 = vadd.f32 1e-08, %v1683_v11 }
 0xcf0   : > { %v1689_v18 = vadd.f32 1e-08, %v1685_v13 }
 0xcf1   : > { %3493 = vrsqrt.f32 %v1687_v14  ;;  %v1678_v19 = vpop.xlane.xlu0 %1677 }
 0xcf2   : > { %3495 = vrsqrt.f32 %v1689_v18  ;;  %v1684_v20 = vmul.f32 0.03125, %v1678_v19 }
 0xcf4   : > { %v1688_v22 = vadd.f32 1e-08, %v1684_v20 }
 0xcf6   : > { %3497 = vrsqrt.f32 %v1688_v22 }
 0xcf7   : > { %v3492_v24 = vpop.eup %3491 }
 0xcf8   : > { %v1694_v27 = vmul.f32 %v3492_v24, %v1662_v43 }
 0xcfa   : > { %v1704_v34 = vmul.f32 %v2758_v25, %v1694_v27 }
 0xcfb   : > { %v3494_v26 = vpop.eup %3493 }
 0xcfc   : > { %v3496_v30 = vpop.eup %3495  ;;  %v1695_v37 = vmul.f32 %v3494_v26, %v4294_v50  ;;  %v1714_v39 = vadd.f32 %v2759_v31, %v1704_v34  ;;  %v2773_v34 = vld [vmem:[%s4705_s6 + $0x2] ss:$0 sm:$0xff] }
 0xcfd   : > { %v1697_v43 = vmul.f32 %v3496_v30, %v4297_v51 }
 0xcfe   : > { %v1705_v41 = vmul.f32 %v2758_v25, %v1695_v37  ;;  %v1718_v48 = vmax.f32 %v1714_v39, 0.0 }
 0xcff   : > { %v1707_v46 = vmul.f32 %v2758_v25, %v1697_v43 }
 0xd00   : > { %v3498_v17 = vpop.eup %3497  ;;  %v1715_v21 = vadd.f32 %v2759_v31, %v1705_v41  ;;  %v1736_v50 = vrot.slane %v1718_v48, 6  ;;  %v1724_v54 = vrot.slane %v1718_v48, 4 }
 0xd01   : > { %v1696_v38 = vmul.f32 %v3498_v17, %v4303_v53  ;;  %v1717_v45 = vadd.f32 %v2759_v31, %v1707_v46 }
 0xd02   : > { %v1719_v42 = vmax.f32 %v1715_v21, 0.0 }
 0xd03   : > { %v1721_v52 = vmax.f32 %v1717_v45, 0.0  ;;  %v1706_v49 = vmul.f32 %v2758_v25, %v1696_v38 }
 0xd04   : > { %1770 = vrot.lane.b32.xlu1 %v1719_v42, %s4720_s13  ;;  %v1737_v16 = vrot.slane %v1719_v42, 6  ;;  %v1725_v55 = vrot.slane %v1719_v42, 4 }
 0xd05   : > { %v1739_v51 = vrot.slane %v1721_v52, 6  ;;  %v1716_v56 = vadd.f32 %v2759_v31, %v1706_v49  ;;  %v1727_v57 = vrot.slane %v1721_v52, 4 }
 0xd06   : > { %v1742_v58 = vsel %vm419_vm3, %v1736_v50, %v1737_v16  ;;  %v1730_v59 = vsel %vm682_vm9, %v1724_v54, %v1725_v55 }
 0xd07   : > { %1754 = vrot.lane.b32.xlu0 %v1742_v58, %s4721_s14  ;;  %v1720_v53 = vmax.f32 %v1716_v56, 0.0  ;;  %v1731_v60 = vsel %vm682_vm9, %v1727_v57, %v1724_v54  ;;  %v1743_v61 = vsel %vm419_vm3, %v1739_v51, %v1736_v50 }
 0xd08   : > { %1768 = vrot.lane.b32.xlu1 %v1718_v48, %s4720_s13  ;;  %v1744_v0 = vsel %vm398_vm4, %v1743_v61, 0.0  ;;  %v1732_v13 = vsel %vm402_vm10, %v1731_v60, 0.0 }
 0xd09   : > { %v1738_v62 = vrot.slane %v1720_v53, 6  ;;  %v1726_v63 = vrot.slane %v1720_v53, 4 }
 0xd0b   : > { %v1741_v1 = vsel %vm419_vm3, %v1737_v16, %v1738_v62  ;;  %v1729_v2 = vsel %vm682_vm9, %v1725_v55, %v1726_v63  ;;  %v1728_v3 = vsel %vm682_vm9, %v1726_v63, %v1727_v57  ;;  %v1740_v5 = vsel %vm419_vm3, %v1738_v62, %v1739_v51 }
 0xd0c   : > { %1752 = vrot.lane.b32.xlu1 %v1744_v0, %s4721_s14  ;;  %v1746_v4 = vsel %vm400_vm7, %v1741_v1, 0.0  ;;  %v1734_v22 = vsel %vm404_vm11, %v1729_v2, 0.0  ;;  %v2783_v0 = vld [vmem:[%s4700_s1 + $0x120] sm:$0xff]  ;;  %v2784_v1 = vld [vmem:[%s4700_s1 + $0x128] sm:$0xff]  ;;  %v2785_v2 = vld [vmem:[%s4700_s1 + $0x130] sm:$0xff] }
 0xd0d   : > { %1756 = vrot.lane.b32.xlu0 %v1746_v4, %s4721_s14  ;;  %v2786_v4 = vld [vmem:[%s4700_s1 + $0x138] sm:$0xff] }
 0xd10   : > { %1758 = vrot.lane.b32.xlu1 %v1740_v5, %s4721_s14  ;;  %v3365_v5 = vpack.c.bf16 %v2786_v4, %v2785_v2 }
 0xd11   : > { %1772 = vrot.lane.b32.xlu0 %v1720_v53, %s4720_s13 }
 0xd14   : > { %1774 = vrot.lane.b32.xlu1 %v1721_v52, %s4720_s13 }
 0xd76   : > { %v1771_v7 = vpop.permute.xlu1 %1770 }
 0xd79   : > { %v1755_v9 = vpop.permute.xlu0 %1754 }
 0xd7a   : > { %v1769_v8 = vpop.permute.xlu1 %1768  ;;  %v1781_v11 = vsel %vm473_vm5, %v1730_v59, %v1755_v9 }
 0xd7b   : > { %v1785_v20 = vsel %vm478_vm6, %v1781_v11, %v1771_v7  ;;  %v2787_v7 = vld [vmem:[%s4700_s1 + $0x140] sm:$0xff]  ;;  %v2789_v11 = vld [vmem:[%s4700_s1 + $0x150] sm:$0xff] }
 0xd7e   : > { %v1753_v12 = vpop.permute.xlu1 %1752 }
 0xd7f   : > { %v1780_v14 = vsel %vm473_vm5, %v1732_v13, %v1753_v12  ;;  %v1757_v18 = vpop.permute.xlu0 %1756  ;;  %v2790_v12 = vld [vmem:[%s4700_s1 + $0x158] sm:$0xff] }
 0xd80   : > { %v1784_v19 = vsel %vm478_vm6, %v1780_v14, %v1769_v8  ;;  %v1782_v25 = vsel %vm473_vm5, %v1734_v22, %v1757_v18  ;;  %v2788_v8 = vld [vmem:[%s4700_s1 + $0x148] sm:$0xff]  ;;  %v3373_v13 = vpack.c.bf16 %v2790_v12, %v2789_v11 }
 0xd81   : > { %3140 = vmatprep.mubr.msk.f32.mxu1 %vm501_vm8, %v1784_v19  ;;  %v3369_v9 = vpack.c.bf16 %v2788_v8, %v2787_v7 }
 0xd82   : > { %v1759_v24 = vpop.permute.xlu1 %1758  ;;  %3141 = vmatmul.mubr.msk.f32.vlgmr.msra.gmra.mrb[8].mxu1 %vm501_vm8, %v1785_v20 }
 0xd83   : > { %v1773_v27 = vpop.permute.xlu0 %1772  ;;  %v1783_v29 = vsel %vm473_vm5, %v1728_v3, %v1759_v24  ;;  %v3361_v3 = vpack.c.bf16 %v2784_v1, %v2783_v0 }
 0xd84   : > { %v1786_v28 = vsel %vm478_vm6, %v1782_v25, %v1773_v27 }
 0xd85   : > { %3143 = vmatprep.mubr.msk.f32.mxu1 %vm501_vm8, %v1786_v28  ;;  %3362 = vmatprep.subr.bf16.mxu0 %v3361_v3 }
 0xd86   : > { %v1775_v31 = vpop.permute.xlu1 %1774  ;;  %3364 = vmatpush3.bf16.msra.mxu0 %v3361_v3 }
 0xd87   : > { %v1787_v32 = vsel %vm478_vm6, %v1783_v29, %v1775_v31  ;;  %3366 = vmatprep.subr.bf16.mxu0 %v3365_v5 }
 0xd88   : > { %3144 = vmatmul.mubr.msk.f32.gmra.mrb[10].mxu1 %vm501_vm8, %v1787_v32 }
 0xd8a   : > { %3368 = vmatpush3.bf16.msra.mxu0 %v3365_v5 }
 0xd8b   : > { %3370 = vmatprep.subr.bf16.mxu0 %v3369_v9 }
 0xd8e   : > { %3372 = vmatpush3.bf16.msra.mxu0 %v3369_v9 }
 0xd8f   : > { %3374 = vmatprep.subr.bf16.mxu0 %v3373_v13 }
 0xd92   : > { %3376 = vmatpush3.bf16.msra.mxu0 %v3373_v13 }
 0xe55   : > { %v3142_v26 = vpop.f32.mrb[8].mxu1 }
 0xe56   : > { %v1885_v35 = vpop.f32.mrb[9].mxu1  ;;  %v1891_v30 = vadd.f32 %v3142_v26, %v2773_v34  ;;  %v2780_v26 = vld [vmem:[%s4706_s7 + $0x2] ss:$0 sm:$0xff] }
 0xe57   : > { %v1886_v36 = vadd.f32 %v2773_v34, %v1885_v35 }
 0xe58   : > { %v1911_v46 = vsel %vm473_vm5, %v1891_v30, 0.0 }
 0xe59   : > { %v1908_v37 = vsel %vm473_vm5, %v1886_v36, 0.0 }
 0xe5a   : > { %1909 = vadd.xlane.f32.xlu0 %v1908_v37  ;;  %v2791_v37 = vld [vmem:[%s4700_s1 + $0x160] sm:$0xff] }
 0xe5b   : > { %v3145_v39 = vpop.f32.mrb[10].mxu1 }
 0xe5c   : > { %v1901_v33 = vadd.f32 %v3145_v39, %v2773_v34  ;;  %v1895_v43 = vpop.f32.mrb[11].mxu1  ;;  %v2792_v39 = vld [vmem:[%s4700_s1 + $0x168] sm:$0xff] }
 0xe5d   : > { %v1896_v41 = vadd.f32 %v2773_v34, %v1895_v43  ;;  %v3377_v43 = vpack.c.bf16 %v2792_v39, %v2791_v37 }
 0xe5e   : > { %1912 = vadd.xlane.f32.xlu0 %v1911_v46  ;;  %v1917_v17 = vsel %vm473_vm5, %v1901_v33, 0.0 }
 0xe5f   : > { %1918 = vadd.xlane.f32.xlu1 %v1917_v17  ;;  %v1914_v21 = vsel %vm473_vm5, %v1896_v41, 0.0  ;;  %3378 = vmatprep.subr.bf16.mxu0 %v3377_v43 }
 0xe60   : > { %3380 = vmatpush3.bf16.msra.mxu0 %v3377_v43 }
 0xe62   : > { %1915 = vadd.xlane.f32.xlu0 %v1914_v21 }
 0xee7   : > { %v1910_v48 = vpop.xlane.xlu0 %1909 }
 0xee8   : > { %v1920_v38 = vmul.f32 0.03125, %v1910_v48  ;;  %v2793_v48 = vld [vmem:[%s4700_s1 + $0x170] sm:$0xff] }
 0xeea   : > { %v1924_v45 = vsub.f32 %v1886_v36, %v1920_v38  ;;  %v2781_v36 = vld [vmem:[%s4707_s8 + $0x2] ss:$0 sm:$0xff]  ;;  %v2794_v38 = vld [vmem:[%s4700_s1 + $0x178] sm:$0xff] }
 0xeeb   : > { %v1913_v42 = vpop.xlane.xlu0 %1912 }
 0xeec   : > { %v1921_v52 = vmul.f32 0.03125, %v1913_v42  ;;  %v1919_v49 = vpop.xlane.xlu1 %1918  ;;  %v1928_v50 = vmul.f32 %v1924_v45, %v1924_v45 }
 0xeed   : > { %v1923_v16 = vmul.f32 0.03125, %v1919_v49 }
 0xeee   : > { %v1925_v54 = vsub.f32 %v1891_v30, %v1921_v52  ;;  %v1932_v55 = vsel %vm473_vm5, %v1928_v50, 0.0  ;;  %v3381_v52 = vpack.c.bf16 %v2794_v38, %v2793_v48 }
 0xeef   : > { %v1927_v51 = vsub.f32 %v1901_v33, %v1923_v16  ;;  %1933 = vadd.xlane.f32.xlu1 %v1932_v55  ;;  %v1916_v56 = vpop.xlane.xlu0 %1915 }
 0xef0   : > { %v1922_v57 = vmul.f32 0.03125, %v1916_v56  ;;  %v1929_v58 = vmul.f32 %v1925_v54, %v1925_v54  ;;  %3382 = vmatprep.subr.bf16.mxu0 %v3381_v52 }
 0xef1   : > { %v1931_v59 = vmul.f32 %v1927_v51, %v1927_v51  ;;  %3384 = vmatpush3.bf16.msra.mxu0 %v3381_v52 }
 0xef2   : > { %v4407_v53 = vsub.f32 %v1896_v41, %v1922_v57  ;;  %v1935_v60 = vsel %vm473_vm5, %v1929_v58, 0.0 }
 0xef3   : > { %1936 = vadd.xlane.f32.xlu1 %v1935_v60  ;;  %v1941_v61 = vsel %vm473_vm5, %v1931_v59, 0.0 }
 0xef4   : > { %1942 = vadd.xlane.f32.xlu0 %v1941_v61  ;;  %v1930_v62 = vmul.f32 %v4407_v53, %v4407_v53 }
 0xef6   : > { %v1938_v63 = vsel %vm473_vm5, %v1930_v62, 0.0 }
 0xef8   : > { %1939 = vadd.xlane.f32.xlu0 %v1938_v63 }
 0xf7c   : > { %v1934_v14 = vpop.xlane.xlu1 %1933 }
 0xf7d   : > { %v1944_v18 = vmul.f32 0.03125, %v1934_v14 }
 0xf7f   : > { %v1948_v19 = vadd.f32 1e-08, %v1944_v18 }
 0xf80   : > { %v1937_v20 = vpop.xlane.xlu1 %1936 }
 0xf81   : > { %3499 = vrsqrt.f32 %v1948_v19  ;;  %v1945_v22 = vmul.f32 0.03125, %v1937_v20  ;;  %v1943_v24 = vpop.xlane.xlu0 %1942 }
 0xf82   : > { %v1947_v25 = vmul.f32 0.03125, %v1943_v24 }
 0xf83   : > { %v1949_v27 = vadd.f32 1e-08, %v1945_v22 }
 0xf84   : > { %v1951_v28 = vadd.f32 1e-08, %v1947_v25 }
 0xf85   : > { %3501 = vrsqrt.f32 %v1949_v27  ;;  %v1940_v29 = vpop.xlane.xlu0 %1939 }
 0xf86   : > { %3503 = vrsqrt.f32 %v1951_v28  ;;  %v1946_v31 = vmul.f32 0.03125, %v1940_v29 }
 0xf88   : > { %v1950_v32 = vadd.f32 1e-08, %v1946_v31 }
 0xf8a   : > { %3505 = vrsqrt.f32 %v1950_v32 }
 0xf8b   : > { %v3500_v34 = vpop.eup %3499 }
 0xf8c   : > { %v1956_v35 = vmul.f32 %v3500_v34, %v1924_v45 }
 0xf8e   : > { %v1966_v30 = vmul.f32 %v2780_v26, %v1956_v35 }
 0xf8f   : > { %v3502_v33 = vpop.eup %3501 }
 0xf90   : > { %v3504_v41 = vpop.eup %3503  ;;  %v1957_v46 = vmul.f32 %v3502_v33, %v1925_v54  ;;  %v1976_v17 = vadd.f32 %v2781_v36, %v1966_v30  ;;  %v2795_v33 = vld [vmem:[%s4701_s2 + $0x3] ss:$0 sm:$0xff] }
 0xf91   : > { %v1959_v21 = vmul.f32 %v3504_v41, %v1927_v51 }
 0xf92   : > { %v1967_v45 = vmul.f32 %v2780_v26, %v1957_v46  ;;  %v1980_v42 = vmax.f32 %v1976_v17, 0.0 }
 0xf93   : > { %v1969_v49 = vmul.f32 %v2780_v26, %v1959_v21 }
 0xf94   : > { %v3506_v50 = vpop.eup %3505  ;;  %v1977_v16 = vadd.f32 %v2781_v36, %v1967_v45  ;;  %v1984_v56 = vadd.f32 %v1980_v42, %v4220_v15 }
 0xf95   : > { %v1958_v54 = vmul.f32 %v3506_v50, %v4407_v53  ;;  %v1979_v55 = vadd.f32 %v2781_v36, %v1969_v49 }
 0xf96   : > { %v1981_v51 = vmax.f32 %v1977_v16, 0.0  ;;  %v2002_v62 = vrot.slane %v1984_v56, 6  ;;  %v1990_v8 = vrot.slane %v1984_v56, 4 }
 0xf97   : > { %v1968_v57 = vmul.f32 %v2780_v26, %v1958_v54  ;;  %v1983_v58 = vmax.f32 %v1979_v55, 0.0 }
 0xf98   : > { %v4459_v59 = vadd.f32 %v1981_v51, %v4223_v47 }
 0xf99   : > { %v1978_v60 = vadd.f32 %v2781_v36, %v1968_v57  ;;  %v4462_v61 = vadd.f32 %v1983_v58, %v4226_v44 }
 0xf9a   : > { %2036 = vrot.lane.b32.xlu1 %v4459_v59, %s4720_s13  ;;  %v2003_v53 = vrot.slane %v4459_v59, 6  ;;  %v1991_v9 = vrot.slane %v4459_v59, 4 }
 0xf9b   : > { %v1982_v63 = vmax.f32 %v1978_v60, 0.0  ;;  %v2005_v0 = vrot.slane %v4462_v61, 6  ;;  %v1993_v7 = vrot.slane %v4462_v61, 4 }
 0xf9c   : > { %v2008_v15 = vsel %vm419_vm3, %v2002_v62, %v2003_v53  ;;  %v1996_v18 = vsel %vm682_vm9, %v1990_v8, %v1991_v9 }
 0xf9d   : > { %2020 = vrot.lane.b32.xlu0 %v2008_v15, %s4721_s14  ;;  %v1986_v47 = vadd.f32 %v1982_v63, %v4237_v40  ;;  %v2009_v44 = vsel %vm419_vm3, %v2005_v0, %v2002_v62  ;;  %v1997_v13 = vsel %vm682_vm9, %v1993_v7, %v1990_v8  ;;  %v2807_v8 = vld [vmem:[%s4704_s5 + $0x130] sm:$0xff] }
 0xf9e   : > { %2034 = vrot.lane.b32.xlu1 %v1984_v56, %s4720_s13  ;;  %v2010_v2 = vsel %vm398_vm4, %v2009_v44, 0.0  ;;  %v1998_v22 = vsel %vm402_vm10, %v1997_v13, 0.0  ;;  %v2809_v13 = vld [vmem:[%s4704_s5 + $0x140] sm:$0xff] }
 0xf9f   : > { %v2004_v1 = vrot.slane %v1986_v47, 6  ;;  %v1992_v14 = vrot.slane %v1986_v47, 4 }
 0xfa1   : > { %v2007_v3 = vsel %vm419_vm3, %v2003_v53, %v2004_v1  ;;  %v2006_v40 = vsel %vm419_vm3, %v2004_v1, %v2005_v0  ;;  %v1995_v25 = vsel %vm682_vm9, %v1991_v9, %v1992_v14  ;;  %v1994_v36 = vsel %vm682_vm9, %v1992_v14, %v1993_v7  ;;  %v2806_v7 = vld [vmem:[%s4704_s5 + $0x128] sm:$0xff] }
 0xfa2   : > { %2018 = vrot.lane.b32.xlu1 %v2010_v2, %s4721_s14  ;;  %v2012_v4 = vsel %vm400_vm7, %v2007_v3, 0.0  ;;  %v2000_v31 = vsel %vm404_vm11, %v1995_v25, 0.0  ;;  %v2810_v14 = vld [vmem:[%s4704_s5 + $0x148] sm:$0xff] }
 0xfa3   : > { %2022 = vrot.lane.b32.xlu0 %v2012_v4, %s4721_s14 }
 0xfa6   : > { %2024 = vrot.lane.b32.xlu1 %v2006_v40, %s4721_s14 }
 0xfa7   : > { %2038 = vrot.lane.b32.xlu0 %v1986_v47, %s4720_s13 }
 0xfaa   : > { %2040 = vrot.lane.b32.xlu1 %v4462_v61, %s4720_s13 }
0x100c   : > { %v2037_v5 = vpop.permute.xlu1 %2036 }
0x100f   : > { %v2021_v12 = vpop.permute.xlu0 %2020 }
0x1010   : > { %v2035_v11 = vpop.permute.xlu1 %2034  ;;  %v2047_v19 = vsel %vm473_vm5, %v1996_v18, %v2021_v12  ;;  %v3393_v18 = vpack.c.bf16 %v2810_v14, %v2809_v13 }
0x1011   : > { %v2051_v29 = vsel %vm478_vm6, %v2047_v19, %v2037_v5  ;;  %v2805_v5 = vld [vmem:[%s4704_s5 + $0x120] sm:$0xff]  ;;  %v2811_v19 = vld [vmem:[%s4704_s5 + $0x150] sm:$0xff] }
0x1012   : > { %v3385_v9 = vpack.c.bf16 %v2806_v7, %v2805_v5 }
0x1014   : > { %v2019_v20 = vpop.permute.xlu1 %2018  ;;  %3386 = vmatprep.subr.bf16.mxu1 %v3385_v9 }
0x1015   : > { %v2046_v24 = vsel %vm473_vm5, %v1998_v22, %v2019_v20  ;;  %v2023_v27 = vpop.permute.xlu0 %2022  ;;  %3388 = vmatpush3.bf16.msra.mxu1 %v3385_v9  ;;  %v2812_v20 = vld [vmem:[%s4704_s5 + $0x158] sm:$0xff] }
0x1016   : > { %v2050_v28 = vsel %vm478_vm6, %v2046_v24, %v2035_v11  ;;  %v2048_v34 = vsel %vm473_vm5, %v2000_v31, %v2023_v27  ;;  %v2808_v11 = vld [vmem:[%s4704_s5 + $0x138] sm:$0xff]  ;;  %v3397_v22 = vpack.c.bf16 %v2812_v20, %v2811_v19 }
0x1017   : > { %3170 = vmatprep.mubr.msk.f32.mxu0 %vm501_vm8, %v2050_v28  ;;  %v3389_v12 = vpack.c.bf16 %v2808_v11, %v2807_v8 }
0x1018   : > { %v2025_v32 = vpop.permute.xlu1 %2024  ;;  %3171 = vmatmul.mubr.msk.f32.vlgmr.msra.gmra.mrb[12].mxu0 %vm501_vm8, %v2051_v29 }
0x1019   : > { %v2039_v26 = vpop.permute.xlu0 %2038  ;;  %v2049_v30 = vsel %vm473_vm5, %v1994_v36, %v2025_v32  ;;  %3390 = vmatprep.subr.bf16.mxu1 %v3389_v12 }
0x101a   : > { %v2052_v35 = vsel %vm478_vm6, %v2048_v34, %v2039_v26  ;;  %3392 = vmatpush3.bf16.msra.mxu1 %v3389_v12 }
0x101b   : > { %3173 = vmatprep.mubr.msk.f32.mxu0 %vm501_vm8, %v2052_v35  ;;  %3394 = vmatprep.subr.bf16.mxu1 %v3393_v18 }
0x101c   : > { %v2041_v37 = vpop.permute.xlu1 %2040 }
0x101d   : > { %v2053_v39 = vsel %vm478_vm6, %v2049_v30, %v2041_v37 }
0x101e   : > { %3174 = vmatmul.mubr.msk.f32.gmra.mrb[14].mxu0 %vm501_vm8, %v2053_v39  ;;  %3396 = vmatpush3.bf16.msra.mxu1 %v3393_v18  ;;  %v2802_v39 = vld [vmem:[%s4702_s3 + $0x3] ss:$0 sm:$0xff] }
0x101f   : > { %3398 = vmatprep.subr.bf16.mxu1 %v3397_v22 }
0x1022   : > { %3400 = vmatpush3.bf16.msra.mxu1 %v3397_v22 }
0x10eb   : > { %v3172_v43 = vpop.f32.mrb[12].mxu0 }
0x10ec   : > { %v2151_v41 = vpop.f32.mrb[13].mxu0  ;;  %v2157_v17 = vadd.f32 %v3172_v43, %v2795_v33  ;;  %v2813_v43 = vld [vmem:[%s4704_s5 + $0x160] sm:$0xff] }
0x10ed   : > { %v2152_v46 = vadd.f32 %v2795_v33, %v2151_v41  ;;  %v2814_v41 = vld [vmem:[%s4704_s5 + $0x168] sm:$0xff] }
0x10ee   : > { %v2177_v52 = vsel %vm473_vm5, %v2157_v17, 0.0 }
0x10ef   : > { %v2174_v21 = vsel %vm473_vm5, %v2152_v46, 0.0 }
0x10f0   : > { %2175 = vadd.xlane.f32.xlu0 %v2174_v21 }
0x10f1   : > { %v3175_v48 = vpop.f32.mrb[14].mxu0 }
0x10f2   : > { %v2167_v38 = vadd.f32 %v3175_v48, %v2795_v33  ;;  %v2161_v45 = vpop.f32.mrb[15].mxu0 }
0x10f3   : > { %v2162_v42 = vadd.f32 %v2795_v33, %v2161_v45  ;;  %v2816_v45 = vld [vmem:[%s4704_s5 + $0x178] sm:$0xff] }
0x10f4   : > { %2178 = vadd.xlane.f32.xlu0 %v2177_v52  ;;  %v2183_v49 = vsel %vm473_vm5, %v2167_v38, 0.0 }
0x10f5   : > { %2184 = vadd.xlane.f32.xlu1 %v2183_v49  ;;  %v2180_v50 = vsel %vm473_vm5, %v2162_v42, 0.0 }
0x10f8   : > { %2181 = vadd.xlane.f32.xlu0 %v2180_v50 }
0x117d   : > { %v2176_v16 = vpop.xlane.xlu0 %2175 }
0x117e   : > { %v2186_v54 = vmul.f32 0.03125, %v2176_v16 }
0x1180   : > { %v2190_v55 = vsub.f32 %v2152_v46, %v2186_v54  ;;  %v2803_v46 = vld [vmem:[%s4703_s4 + $0x3] ss:$0 sm:$0xff] }
0x1181   : > { %v2179_v51 = vpop.xlane.xlu0 %2178 }
0x1182   : > { %v2187_v56 = vmul.f32 0.03125, %v2179_v51  ;;  %v2185_v57 = vpop.xlane.xlu1 %2184  ;;  %v2194_v58 = vmul.f32 %v2190_v55, %v2190_v55 }
0x1183   : > { %v2189_v60 = vmul.f32 0.03125, %v2185_v57 }
0x1184   : > { %v4522_v62 = vsub.f32 %v2157_v17, %v2187_v56  ;;  %v2198_v53 = vsel %vm473_vm5, %v2194_v58, 0.0  ;;  %v3401_v17 = vpack.c.bf16 %v2814_v41, %v2813_v43 }
0x1185   : > { %v4525_v63 = vsub.f32 %v2167_v38, %v2189_v60  ;;  %2199 = vadd.xlane.f32.xlu1 %v2198_v53  ;;  %v2182_v0 = vpop.xlane.xlu0 %2181  ;;  %v2815_v38 = vld [vmem:[%s4704_s5 + $0x170] sm:$0xff] }
0x1186   : > { %v2188_v15 = vmul.f32 0.03125, %v2182_v0  ;;  %v2195_v47 = vmul.f32 %v4522_v62, %v4522_v62  ;;  %3402 = vmatprep.subr.bf16.mxu1 %v3401_v17  ;;  %v3405_v50 = vpack.c.bf16 %v2816_v45, %v2815_v38 }
0x1187   : > { %v2197_v44 = vmul.f32 %v4525_v63, %v4525_v63  ;;  %3404 = vmatpush3.bf16.msra.mxu1 %v3401_v17 }
0x1188   : > { %v4531_v1 = vsub.f32 %v2162_v42, %v2188_v15  ;;  %v2201_v2 = vsel %vm473_vm5, %v2195_v47, 0.0  ;;  %3406 = vmatprep.subr.bf16.mxu1 %v3405_v50 }
0x1189   : > { %2202 = vadd.xlane.f32.xlu1 %v2201_v2  ;;  %v2207_v3 = vsel %vm473_vm5, %v2197_v44, 0.0 }
0x118a   : > { %2208 = vadd.xlane.f32.xlu0 %v2207_v3  ;;  %v2196_v4 = vmul.f32 %v4531_v1, %v4531_v1 }
0x118b   : > { %3408 = vmatpush3.bf16.msra.mxu1 %v3405_v50 }
0x118c   : > { %v2204_v40 = vsel %vm473_vm5, %v2196_v4, 0.0 }
0x118e   : > { %2205 = vadd.xlane.f32.xlu0 %v2204_v40 }
0x1212   : > { %v2200_v24 = vpop.xlane.xlu1 %2199 }
0x1213   : > { %v2210_v25 = vmul.f32 0.03125, %v2200_v24 }
0x1215   : > { %v2214_v27 = vadd.f32 1e-08, %v2210_v25 }
0x1216   : > { %v2203_v28 = vpop.xlane.xlu1 %2202 }
0x1217   : > { %3507 = vrsqrt.f32 %v2214_v27  ;;  %v2211_v29 = vmul.f32 0.03125, %v2203_v28  ;;  %v2209_v31 = vpop.xlane.xlu0 %2208 }
0x1218   : > { %v2213_v32 = vmul.f32 0.03125, %v2209_v31 }
0x1219   : > { %v2215_v34 = vadd.f32 1e-08, %v2211_v29  ;;  %v2817_v29 = vld [vmem:[%s4705_s6 + $0x3] ss:$0 sm:$0xff] }
0x121a   : > { %v2217_v26 = vadd.f32 1e-08, %v2213_v32 }
0x121b   : > { %3509 = vrsqrt.f32 %v2215_v34  ;;  %v2206_v35 = vpop.xlane.xlu0 %2205 }
0x121c   : > { %3511 = vrsqrt.f32 %v2217_v26  ;;  %v2212_v36 = vmul.f32 0.03125, %v2206_v35 }
0x121e   : > { %v2216_v30 = vadd.f32 1e-08, %v2212_v36 }
0x1220   : > { %3513 = vrsqrt.f32 %v2216_v30 }
0x1221   : > { %v3508_v37 = vpop.eup %3507 }
0x1222   : > { %v2222_v33 = vmul.f32 %v3508_v37, %v2190_v55 }
0x1224   : > { %v2232_v21 = vmul.f32 %v2802_v39, %v2222_v33 }
0x1225   : > { %v3510_v48 = vpop.eup %3509 }
0x1226   : > { %v3512_v42 = vpop.eup %3511  ;;  %v2223_v52 = vmul.f32 %v3510_v48, %v4522_v62  ;;  %v2242_v49 = vadd.f32 %v2803_v46, %v2232_v21 }
0x1227   : > { %v2225_v16 = vmul.f32 %v3512_v42, %v4525_v63 }
0x1228   : > { %v2233_v54 = vmul.f32 %v2802_v39, %v2223_v52  ;;  %v2246_v57 = vmax.f32 %v2242_v49, 0.0 }
0x1229   : > { %v2235_v55 = vmul.f32 %v2802_v39, %v2225_v16 }
0x122a   : > { %v3514_v51 = vpop.eup %3513  ;;  %v2243_v56 = vadd.f32 %v2803_v46, %v2233_v54  ;;  %v2256_v62 = vrot.slane %v2246_v57, 4 }
0x122b   : > { %v2224_v58 = vmul.f32 %v3514_v51, %v4531_v1  ;;  %v2245_v60 = vadd.f32 %v2803_v46, %v2235_v55 }
0x122c   : > { %v2247_v53 = vmax.f32 %v2243_v56, 0.0 }
0x122d   : > { %v2249_v0 = vmax.f32 %v2245_v60, 0.0  ;;  %v2234_v15 = vmul.f32 %v2802_v39, %v2224_v58  ;;  %v2515_v58 = vld [vmem:[%s4708_s9 + $0x8] sm:$0xff] }
0x122e   : > { %2290 = vrot.lane.b32.xlu1 %v2247_v53, %s4720_s13  ;;  %v2257_v47 = vrot.slane %v2247_v53, 4  ;;  %v3589_v53 = vmov 0.0|0.0  }
0x122f   : > { %v2259_v44 = vrot.slane %v2249_v0, 4  ;;  %v2244_v2 = vadd.f32 %v2803_v46, %v2234_v15  ;;  %3409 = vmatprep.subr.bf16.mxu0 %v3589_v53  ;;  %v2517_v15 = vld [vmem:[%s4708_s9 + $0x18] sm:$0xff] }
0x1230   : > { %v2262_v63 = vsel %vm682_vm9, %v2256_v62, %v2257_v47 }
0x1231   : > { %2274 = vrot.lane.b32.xlu0 %v2262_v63, %s4721_s14  ;;  %v2248_v3 = vmax.f32 %v2244_v2, 0.0  ;;  %v2263_v1 = vsel %vm682_vm9, %v2259_v44, %v2256_v62 }
0x1232   : > { %2288 = vrot.lane.b32.xlu1 %v2246_v57, %s4720_s13  ;;  %v2264_v40 = vsel %vm402_vm10, %v2263_v1, 0.0 }
0x1233   : > { %v2258_v4 = vrot.slane %v2248_v3, 4 }
0x1235   : > { %v2261_v5 = vsel %vm682_vm9, %v2257_v47, %v2258_v4  ;;  %v2260_v8 = vsel %vm682_vm9, %v2258_v4, %v2259_v44  ;;  %v3591_v47 = vmov 0.0  }
0x1236   : > { %2272 = vrot.lane.b32.xlu1 %v2264_v40, %s4721_s14  ;;  %v2266_v7 = vsel %vm404_vm11, %v2261_v5, 0.0  ;;  %3214 = vmatprep.mubr.msk.f32.mxu0 %vm3590_vm12, %v3591_v47 }
0x1237   : > { %2276 = vrot.lane.b32.xlu0 %v2266_v7, %s4721_s14 }
0x123a   : > { %2278 = vrot.lane.b32.xlu1 %v2260_v8, %s4721_s14  ;;  %s3523_s14 = scalar_lea.vmem %s4659_s24, 32 }
0x123b   : > { %2292 = vrot.lane.b32.xlu0 %v2248_v3, %s4720_s13  ;;  %p3524_p11 = scmp.ne.s32.totalorder %s4659_s24, %s3523_s14  ;;  %p3531_p1 = scmp.lt.s32.totalorder %s3529_s22, %s3523_s14 }
0x123d   : > { %p3525_p12 = pnand %p3524_p11, %p3691_p5  ;;  %p3532_p2 = por %p3531_p1, %p3530_p0 }
0x123e   : > { %2294 = vrot.lane.b32.xlu1 %v2249_v0, %s4720_s13  ;;  %v2516_v0 = vld [vmem:[%s4708_s9 + $0x10] sm:$0xff]  ;;  %s2601_s13 = scalar_lea.sflag [#allocation4], %s377_s15 }
0x123f   : > { %v3413_v62 = vpack.c.bf16 %v2517_v15, %v2516_v0  ;;  %p3526_p13 = pneg %p3525_p12 }
0x1241   : > { %p3533_p3 = pnand %p3532_p2, %p3526_p13 }
0x12a0   : > { %v2291_v10 = vpop.permute.xlu1 %2290 }
0x12a3   : > { %v2275_v11 = vpop.permute.xlu0 %2274 }
0x12a4   : > { %v2289_v9 = vpop.permute.xlu1 %2288  ;;  %v2301_v12 = vsel %vm473_vm5, %v2246_v57, %v2275_v11  ;;  %v2514_v57 = vld [vmem:[%s4708_s9] sm:$0xff] }
0x12a5   : > { %v2305_v6 = vsel %vm478_vm6, %v2301_v12, %v2291_v10  ;;  %v3410_v60 = vpack.c.bf16 %v2515_v58, %v2514_v57  ;;  %v2824_v12 = vld [vmem:[%s4706_s7 + $0x3] ss:$0 sm:$0xff] }
0x12a7   : > { %3411 = vmatpush3.bf16.msra.mxu0 %v3410_v60 }
0x12a8   : > { %v2273_v13 = vpop.permute.xlu1 %2272  ;;  %3412 = vmatprep.subr.bf16.mxu0 %v3589_v53 }
0x12a9   : > { %v2300_v23 = vsel %vm473_vm5, 0.0, %v2273_v13  ;;  %v2277_v14 = vpop.permute.xlu0 %2276 }
0x12aa   : > { %v2304_v18 = vsel %vm478_vm6, %v2300_v23, %v2289_v9  ;;  %v2302_v20 = vsel %vm473_vm5, 0.0, %v2277_v14  ;;  %v2825_v14 = vld [vmem:[%s4707_s8 + $0x3] ss:$0 sm:$0xff] }
0x12ab   : > { %3200 = vmatprep.mubr.msk.f32.mxu1 %vm501_vm8, %v2304_v18  ;;  %3414 = vmatpush3.bf16.msra.mxu0 %v3413_v62 }
0x12ac   : > { %v2279_v19 = vpop.permute.xlu1 %2278  ;;  %3201 = vmatmul.mubr.msk.f32.vlgmr.msra.gmra.mrb[12].mxu1 %vm501_vm8, %v2305_v6 }
0x12ad   : > { %v2293_v22 = vpop.permute.xlu0 %2292  ;;  %v2303_v25 = vsel %vm473_vm5, %v2248_v3, %v2279_v19 }
0x12ae   : > { %v2306_v24 = vsel %vm478_vm6, %v2302_v20, %v2293_v22 }
0x12af   : > { %3203 = vmatprep.mubr.msk.f32.mxu1 %vm501_vm8, %v2306_v24 }
0x12b0   : > { %v2295_v27 = vpop.permute.xlu1 %2294 }
0x12b1   : > { %v2307_v28 = vsel %vm478_vm6, %v2303_v25, %v2295_v27 }
0x12b2   : > { %3204 = vmatmul.mubr.msk.f32.gmra.mrb[14].mxu1 %vm501_vm8, %v2307_v28 }
0x137f   : > { %v3202_v31 = vpop.f32.mrb[12].mxu1 }
0x1380   : > { %v2411_v32 = vadd.f32 %v3202_v31, %v2817_v29  ;;  %v2405_v34 = vpop.f32.mrb[13].mxu1 }
0x1381   : > { %v2406_v39 = vadd.f32 %v2817_v29, %v2405_v34 }
0x1382   : > { %v2431_v26 = vsel %vm473_vm5, %v2411_v32, 0.0 }
0x1383   : > { %2432 = vadd.xlane.f32.xlu0 %v2431_v26  ;;  %v2428_v43 = vsel %vm473_vm5, %v2406_v39, 0.0 }
0x1385   : > { %v3205_v35 = vpop.f32.mrb[14].mxu1 }
0x1386   : > { %v2421_v36 = vadd.f32 %v3205_v35, %v2817_v29  ;;  %v2415_v30 = vpop.f32.mrb[15].mxu1 }
0x1387   : > { %v2416_v37 = vadd.f32 %v2817_v29, %v2415_v30 }
0x1388   : > { %v2437_v33 = vsel %vm473_vm5, %v2421_v36, 0.0 }
0x1389   : > { %2438 = vadd.xlane.f32.xlu1 %v2437_v33  ;;  %v2434_v56 = vsel %vm473_vm5, %v2416_v37, 0.0 }
0x138d   : > { %2429 = vadd.xlane.f32.xlu1 %v2428_v43 }
0x1410   : > { %v2433_v41 = vpop.xlane.xlu0 %2432 }
0x1411   : > { %v2441_v46 = vmul.f32 0.03125, %v2433_v41 }
0x1413   : > { %v2445_v17 = vsub.f32 %v2411_v32, %v2441_v46 }
0x1415   : > { %v2449_v21 = vmul.f32 %v2445_v17, %v2445_v17 }
0x1416   : > { %v2439_v48 = vpop.xlane.xlu1 %2438 }
0x1417   : > { %v2443_v38 = vmul.f32 0.03125, %v2439_v48  ;;  %v2455_v45 = vsel %vm473_vm5, %v2449_v21, 0.0 }
0x1418   : > { %2456 = vadd.xlane.f32.xlu0 %v2455_v45 }
0x1419   : > { %v2447_v42 = vsub.f32 %v2421_v36, %v2443_v38 }
0x141a   : > { %v2430_v52 = vpop.xlane.xlu1 %2429 }
0x141b   : > { %v2440_v49 = vmul.f32 0.03125, %v2430_v52  ;;  %v2451_v50 = vmul.f32 %v2447_v42, %v2447_v42 }
0x141d   : > { %v2444_v16 = vsub.f32 %v2406_v39, %v2440_v49  ;;  %v2461_v54 = vsel %vm473_vm5, %v2451_v50, 0.0 }
0x141e   : > { %2462 = vadd.xlane.f32.xlu0 %v2461_v54 }
0x141f   : > { %v2448_v55 = vmul.f32 %v2444_v16, %v2444_v16 }
0x1421   : > { %v2452_v51 = vsel %vm473_vm5, %v2448_v55, 0.0 }
0x1422   : > { %2453 = vadd.xlane.f32.xlu1 %v2452_v51  ;;  %2435 = vadd.xlane.f32.xlu0 %v2434_v56 }
0x14a5   : > { %v2457_v44 = vpop.xlane.xlu0 %2456 }
0x14a6   : > { %v2465_v2 = vmul.f32 0.03125, %v2457_v44 }
0x14a8   : > { %v2469_v63 = vadd.f32 1e-08, %v2465_v2 }
0x14aa   : > { %3515 = vrsqrt.f32 %v2469_v63 }
0x14ab   : > { %v2463_v3 = vpop.xlane.xlu0 %2462 }
0x14ac   : > { %v2467_v1 = vmul.f32 0.03125, %v2463_v3 }
0x14ae   : > { %v2471_v4 = vadd.f32 1e-08, %v2467_v1 }
0x14af   : > { %v2454_v40 = vpop.xlane.xlu1 %2453  ;;  %v2436_v5 = vpop.xlane.xlu0 %2435 }
0x14b0   : > { %3517 = vrsqrt.f32 %v2471_v4  ;;  %v2464_v7 = vmul.f32 0.03125, %v2454_v40  ;;  %v2442_v8 = vmul.f32 0.03125, %v2436_v5 }
0x14b2   : > { %v2468_v10 = vadd.f32 1e-08, %v2464_v7  ;;  %v2446_v9 = vsub.f32 %v2416_v37, %v2442_v8 }
0x14b4   : > { %v3516_v11 = vpop.eup %3515  ;;  %3519 = vrsqrt.f32 %v2468_v10  ;;  %v2450_v13 = vmul.f32 %v2446_v9, %v2446_v9 }
0x14b5   : > { %v2477_v23 = vmul.f32 %v3516_v11, %v2445_v17 }
0x14b6   : > { %v2458_v18 = vsel %vm473_vm5, %v2450_v13, 0.0 }
0x14b7   : > { %v2487_v6 = vmul.f32 %v2824_v12, %v2477_v23  ;;  %2459 = vadd.xlane.f32.xlu0 %v2458_v18 }
0x14b9   : > { %v2497_v19 = vadd.f32 %v2825_v14, %v2487_v6 }
0x14ba   : > { %v3518_v20 = vpop.eup %3517 }
0x14bb   : > { %v2501_v22 = vmax.f32 %v2497_v19, 0.0  ;;  %v2479_v24 = vmul.f32 %v3518_v20, %v2447_v42 }
0x14bd   : > { %v2505_v25 = vadd.f32 %v2501_v22, %v4459_v59  ;;  %v2489_v27 = vmul.f32 %v2824_v12, %v2479_v24  ;;  %v2826_v59 = vld [vmem:[%s4709_s10] ss:$0 sm:$0xff] }
0x14be   : > { %v3520_v28 = vpop.eup %3519 }
0x14bf   : > { %2509 = vst.msk [vmem:[#allocation2 + $0x8] sm:$0xff] %vm473_vm5, %v2505_v25  ;;  %v2499_v29 = vadd.f32 %v2825_v14, %v2489_v27 }
0x14c1   : > { %v2503_v31 = vmax.f32 %v2499_v29, 0.0 }
0x14c3   : > { %v2507_v32 = vadd.f32 %v2503_v31, %v4462_v61 }
0x14c5   : > { %2511 = vst.msk [vmem:[#allocation2 + $0x18] sm:$0xff] %vm473_vm5, %v2507_v32 }
0x14cc   : > { %v2513_v34 = vld [vmem:[#allocation2 + $0xf] ss:$16 sm:$0x3] }
0x14cd   : > { %3215 = vmatmul.mubr.msk.f32.vlgmr.msra.gmra.mrb[16].mxu0 %vm473_vm5, %v2513_v34 }
0x1544   : > { %v2460_v26 = vpop.xlane.xlu0 %2459 }
0x1545   : > { %v2466_v35 = vmul.f32 0.03125, %v2460_v26 }
0x1547   : > { %v2470_v36 = vadd.f32 1e-08, %v2466_v35 }
0x1549   : > { %3521 = vrsqrt.f32 %v2470_v36 }
0x1553   : > { %v3522_v30 = vpop.eup %3521 }
0x15a0   : > { %v2594_v61 = vpop.f32.mrb[16].mxu0 }
0x15a1   : > { %v2595_v37 = vadd.f32 %v2826_v59, %v2594_v61  ;;  %v3216_v39 = vpop.f32.mrb[17].mxu0 }
0x15a3   : > { %2599 = vst.msk [vmem:[%s379_s30] sm:$0x3] %vm2598_vm13, %v2595_v37 }
0x15a4   : > { %3536 = shalt.err (!%p3533_p3)
}
0x15a5   : > { %s3537_s15 = scalar_lea.hbm %s4657_s26, 32  ;;  %s3541_s30 = scalar_lea.hbm %s4710_s11, 64 }
0x15a6   : > { %p3538_p4 = scmp.ne.s32.totalorder %s4657_s26, %s3537_s15  ;;  %p3542_p9 = scmp.lt.u32.totalorder %s4657_s26, %s4710_s11 }
0x15a7   : > { %p3543_p10 = scmp.lt.u32.totalorder %s3541_s30, %s3537_s15  ;;  %p3545_p12 = scmp.lt.u32.totalorder %s3537_s15, %s4657_s26 }
0x15a8   : > { %p3539_p7 = pnand %p3538_p4, %p3691_p5 }
0x15a9   : > { %p3544_p11 = por %p3543_p10, %p3542_p9 }
0x15aa   : > { %p3540_p8 = pneg %p3539_p7 }
0x15ab   : > { %p3546_p13 = por %p3545_p12, %p3544_p11 }
0x15ad   : > { %p3547_p0 = pnand %p3546_p13, %p3540_p8 }
0x15af   : > { %3550 = shalt.err (!%p3547_p0)
}
0x15b0   : > { %3415 = dma.vmem_to_hbm [thread:$0]  (%p3691_p5), %s4659_s24, 32, %s4657_s26, %s2601_s13  }
0x15b1 PF: > { %p3421_p1 = scmp.ge.s32.totalorder %s3585_s20, 2  ;;  %s2626_s14 = sand.u32 1, %s3573_s17  }
0x15b2   : > { %s2627_s21 = scalar_lea.sflag [#allocation4], %s2626_s14 }
0x15b3   : > { %p3418_p2 = pnand %p3421_p1, %p3695_p6 }
0x15b5   : > { %3568 = dma.done.wait (!%p3418_p2), %s2627_s21, 32  }
0x15b6   : > { %3570 = vsyncadd (!%p3418_p2), %s2627_s21, 4294967264  ;;  %s4722_s16 = sld [smem:[#allocation6_spill]]  ;;  %p21_p3 = scmp.ge.s32.totalorder %s3678_s23, 4  }
0x15b7   : > { %s4723_s17 = smov %s3577_s18  ;;  %s4724_s18 = smov %s3581_s19 }
0x15b8   : > { %s4726_s20 = smov %s3678_s23  ;;  %23 = sbr.rel (!%p21_p3) target bundleno = 5 (0x5), region = 124 }
0x15bc   : > { %s4725_s19 = smov %s4722_s16 }
0x15bf   :  { %2632 = vsyncpa [#allocation4], 1 }
0x15c0   :  { %2634 = vsyncpa [#allocation4 + $0x1], 1 }

</bundles_post_ra>
